<compile_context>
chip_gen: v7x
topology: tpu7x:2x2x1
jax: 0.10.0
libtpu: 0.0.40
codegen_flags: <defaults>
</compile_context>

<pallas_src>
import functools
import math

import jax
import jax.numpy as jnp
from jax import lax
from jax.experimental import pallas as pl
from jax.experimental.pallas import tpu as pltpu


_GELU_C = math.sqrt(2.0 / math.pi)


def _gelu_tanh(y):
    return 0.5 * y * (1.0 + jnp.tanh(_GELU_C * (y + 0.044715 * y * y * y)))


def _round_up(x, m):
    return ((x + m - 1) // m) * m


def _row_tiling(M, tm):
    tm_eff = min(tm, _round_up(M, 8))
    Mp = _round_up(M, tm_eff)
    return tm_eff, Mp


def _col_tiling(n_out, max_tn=2048):
    """Largest column tile <= max_tn that divides n_out (multiple of 128)."""
    if n_out <= max_tn:
        return n_out
    for tn in range(max_tn - max_tn % 128, 127, -128):
        if n_out % tn == 0:
            return tn
    return n_out  # fall back to fully resident weight


def _nbytes(a):
    return math.prod(a.shape) * jnp.dtype(a.dtype).itemsize


def _vmem_limit(nbytes):
    # computed footprint * headroom, clamped to a range safe on v5e/v6e/v7x.
    return int(min(max(int(nbytes * 1.5) + (4 << 20), 32 << 20), 56 << 20))


# ------------------------------ Pallas kernels ----------------------------- #

def _ln_matmul_kernel(x_ref, g_ref, b_ref, w_ref, wb_ref, o_ref, *, eps, act):
    """o = act((LayerNorm(x) * g + b) @ w + wb); LN in f32, matmul in bf16."""
    x = x_ref[...].astype(jnp.float32)                       # (tm, C)
    mu = jnp.mean(x, axis=-1, keepdims=True)
    xc = x - mu
    var = jnp.mean(xc * xc, axis=-1, keepdims=True)
    h = xc * lax.rsqrt(var + eps)
    h = h * g_ref[...] + b_ref[...]                          # LN affine (f32)
    y = jnp.dot(h.astype(w_ref.dtype), w_ref[...],
                preferred_element_type=jnp.float32)          # bf16 x bf16 -> f32
    y = y + wb_ref[...]
    if act == "gelu":
        y = _gelu_tanh(y)
    o_ref[...] = y.astype(o_ref.dtype)


def _matmul_bias_res_kernel(a_ref, w_ref, b_ref, g_ref, r_ref, o_ref):
    """o = r + g * (a @ w + b); a/w bf16, accumulate and residual add in f32."""
    y = jnp.dot(a_ref[...], w_ref[...], preferred_element_type=jnp.float32)
    y = (y + b_ref[...]) * g_ref[...]
    o_ref[...] = (r_ref[...].astype(jnp.float32) + y).astype(o_ref.dtype)


def _attention_kernel(qkv_ref, o_ref, *, num_heads, head_dim, n_valid):
    """Softmax attention for one q-row tile of one batch, all heads.

    qkv_ref: (1, N_pad, 3*H*hd) bf16 (whole sequence, resident per batch).
    o_ref:   (1, tq, H*hd)      bf16 (lane-dense output tile).
    The attention scale is already folded into the q columns of w_qkv.
    """
    nh, hd = num_heads, head_dim
    ah = nh * hd
    tq = o_ref.shape[1]
    n_pad = qkv_ref.shape[1]
    row0 = pl.multiple_of(pl.program_id(1) * tq, tq)
    if n_valid != n_pad:
        kmask = lax.broadcasted_iota(jnp.int32, (1, n_pad), 1) < n_valid
    outs = []
    for h in range(nh):                                       # static unroll
        q = qkv_ref[0, pl.ds(row0, tq), pl.ds(h * hd, hd)]            # (tq, hd)
        k = qkv_ref[0, pl.ds(0, n_pad), pl.ds(ah + h * hd, hd)]       # (N, hd)
        v = qkv_ref[0, pl.ds(0, n_pad), pl.ds(2 * ah + h * hd, hd)]   # (N, hd)
        s = lax.dot_general(q, k, (((1,), (1,)), ((), ())),
                            preferred_element_type=jnp.float32)       # (tq, N)
        if n_valid != n_pad:
            s = jnp.where(kmask, s, -1e30)
        s = s - jnp.max(s, axis=-1, keepdims=True)
        p = jnp.exp(s)
        p = p * pl.reciprocal(jnp.sum(p, axis=-1, keepdims=True), approx=True)
        outs.append(jnp.dot(p.astype(v.dtype), v,
                            preferred_element_type=jnp.float32))      # (tq, hd)
    o_ref[0] = jnp.concatenate(outs, axis=-1).astype(o_ref.dtype)


# ------------------------------ Pallas wrappers ---------------------------- #

def _ln_matmul_bias(x, ln_g, ln_b, w, b, *, act=None, eps=1e-5,
                    out_dtype=None, tm=512):
    """x: (M, C) f32, w: (C, Nout) bf16 -> (M, Nout) out_dtype."""
    M, C = x.shape
    _, Nout = w.shape
    out_dtype = out_dtype or x.dtype
    tm_eff, Mp = _row_tiling(M, tm)
    tn = _col_tiling(Nout)
    ncol, nrow = Nout // tn, Mp // tm_eff
    if Mp != M:
        x = jnp.pad(x, ((0, Mp - M), (0, 0)))
    resident = ncol == 1

    def _res(shape, index_map):
        if resident:
            return pl.BlockSpec(shape, index_map, pipeline_mode=pl.Buffered(1))
        return pl.BlockSpec(shape, index_map)

    w_bytes = C * tn * jnp.dtype(w.dtype).itemsize * (1 if resident else 2)
    tile_bytes = (2 * tm_eff * C * jnp.dtype(x.dtype).itemsize
                  + 2 * tm_eff * tn * jnp.dtype(out_dtype).itemsize)
    out = pl.pallas_call(
        functools.partial(_ln_matmul_kernel, eps=eps, act=act),
        out_shape=jax.ShapeDtypeStruct((Mp, Nout), out_dtype),
        grid_spec=pltpu.PrefetchScalarGridSpec(
            num_scalar_prefetch=0,
            grid=(ncol, nrow),               # row axis innermost: weight stays put
            in_specs=[
                pl.BlockSpec((tm_eff, C), lambda j, i: (i, 0)),   # x tile
                pl.BlockSpec((1, C), lambda j, i: (0, 0),
                             pipeline_mode=pl.Buffered(1)),       # LN gamma
                pl.BlockSpec((1, C), lambda j, i: (0, 0),
                             pipeline_mode=pl.Buffered(1)),       # LN beta
                _res((C, tn), lambda j, i: (0, j)),               # weight (bf16)
                _res((1, tn), lambda j, i: (0, j)),               # bias
            ],
            out_specs=pl.BlockSpec((tm_eff, tn), lambda j, i: (i, j)),
        ),
        compiler_params=pltpu.CompilerParams(
            dimension_semantics=("parallel", "parallel"),
            vmem_limit_bytes=_vmem_limit(w_bytes + tile_bytes)),
        cost_estimate=pl.CostEstimate(
            flops=2 * Mp * C * Nout,
            transcendentals=(Mp * Nout if act == "gelu" else 0),
            bytes_accessed=_nbytes(x) + _nbytes(w)
            + Mp * Nout * jnp.dtype(out_dtype).itemsize),
    )(x, ln_g.reshape(1, C), ln_b.reshape(1, C), w, b.reshape(1, Nout))
    return out[:M] if Mp != M else out


def _matmul_bias_residual(a, w, b, gamma, residual, *, tm=512):
    """residual + gamma * (a @ w + b); a: (M, K) bf16, w: (K, C) bf16."""
    M, K = a.shape
    _, C = w.shape
    tm_eff, Mp = _row_tiling(M, tm)
    tn = _col_tiling(C)
    ncol, nrow = C // tn, Mp // tm_eff
    if Mp != M:
        a = jnp.pad(a, ((0, Mp - M), (0, 0)))
        residual = jnp.pad(residual, ((0, Mp - M), (0, 0)))
    resident = ncol == 1

    def _res(shape, index_map):
        if resident:
            return pl.BlockSpec(shape, index_map, pipeline_mode=pl.Buffered(1))
        return pl.BlockSpec(shape, index_map)

    w_bytes = K * tn * jnp.dtype(w.dtype).itemsize * (1 if resident else 2)
    tile_bytes = (2 * tm_eff * K * jnp.dtype(a.dtype).itemsize
                  + 4 * tm_eff * tn * jnp.dtype(residual.dtype).itemsize)
    out = pl.pallas_call(
        _matmul_bias_res_kernel,
        out_shape=jax.ShapeDtypeStruct((Mp, C), residual.dtype),
        grid_spec=pltpu.PrefetchScalarGridSpec(
            num_scalar_prefetch=0,
            grid=(ncol, nrow),
            in_specs=[
                pl.BlockSpec((tm_eff, K), lambda j, i: (i, 0)),   # activations
                _res((K, tn), lambda j, i: (0, j)),               # weight (bf16)
                _res((1, tn), lambda j, i: (0, j)),               # bias
                _res((1, tn), lambda j, i: (0, j)),               # layer-scale gamma
                pl.BlockSpec((tm_eff, tn), lambda j, i: (i, j)),  # residual
            ],
            out_specs=pl.BlockSpec((tm_eff, tn), lambda j, i: (i, j)),
        ),
        compiler_params=pltpu.CompilerParams(
            dimension_semantics=("parallel", "parallel"),
            vmem_limit_bytes=_vmem_limit(w_bytes + tile_bytes)),
        cost_estimate=pl.CostEstimate(
            flops=2 * Mp * K * C, transcendentals=0,
            bytes_accessed=_nbytes(a) + _nbytes(w) + 2 * _nbytes(residual)),
    )(a, w, b.reshape(1, C), gamma.reshape(1, C), residual)
    return out[:M] if Mp != M else out


def _multihead_attention(qkv, num_heads, head_dim, *, tq_max=256):
    """qkv: (B, N, 3*H*hd) bf16 -> (B, N, H*hd) bf16, no HBM transposes."""
    B, N, three_ah = qkv.shape
    ah = num_heads * head_dim
    tq = min(tq_max, _round_up(N, 8))
    n_pad = _round_up(N, tq)
    if n_pad != N:
        qkv = jnp.pad(qkv, ((0, 0), (0, n_pad - N), (0, 0)))
    nq = n_pad // tq
    isz = jnp.dtype(qkv.dtype).itemsize
    vmem = (2 * n_pad * three_ah * isz          # resident qkv block (dbl-buffered)
            + 2 * tq * ah * isz                 # output tile
            + 8 * tq * n_pad)                   # f32 score/prob temporaries
    out = pl.pallas_call(
        functools.partial(_attention_kernel, num_heads=num_heads,
                          head_dim=head_dim, n_valid=N),
        out_shape=jax.ShapeDtypeStruct((B, n_pad, ah), qkv.dtype),
        grid_spec=pltpu.PrefetchScalarGridSpec(
            num_scalar_prefetch=0,
            grid=(B, nq),
            in_specs=[pl.BlockSpec((1, n_pad, three_ah),
                                   lambda b, qi: (b, 0, 0))],
            out_specs=pl.BlockSpec((1, tq, ah), lambda b, qi: (b, qi, 0)),
        ),
        compiler_params=pltpu.CompilerParams(
            dimension_semantics=("parallel", "parallel"),
            vmem_limit_bytes=_vmem_limit(vmem)),
        cost_estimate=pl.CostEstimate(
            flops=4 * B * num_heads * n_pad * n_pad * head_dim,
            transcendentals=B * num_heads * n_pad * n_pad,
            bytes_accessed=2 * _nbytes(qkv)),
    )(qkv)
    return out[:, :N] if n_pad != N else out


# --------------------------------- Block ----------------------------------- #

class BlockPallas:
    """Pallas port of the PyTorch transformer `Block` forward pass (eval)."""

    def __init__(self, dim, num_heads, mlp_ratio=4.0, qkv_bias=False,
                 qk_scale=None, init_values=None, attn_head_dim=None,
                 eps=1e-5, key=jax.random.PRNGKey(0)):
        self.dim = dim
        self.num_heads = num_heads
        head_dim = dim // num_heads
        if attn_head_dim is not None:
            head_dim = attn_head_dim
        self.head_dim = head_dim
        self.all_head_dim = head_dim * num_heads
        self.scale = qk_scale or head_dim ** (-0.5)
        self.hidden = int(dim * mlp_ratio)
        self.eps = eps

        ks = jax.random.split(key, 16)
        init = lambda k, shape: 0.02 * jax.random.normal(k, shape, jnp.float32)

        # LayerNorm affine parameters (randomized to exercise the math).
        self.n1_g = 1.0 + 0.1 * jax.random.normal(ks[0], (dim,), jnp.float32)
        self.n1_b = 0.1 * jax.random.normal(ks[1], (dim,), jnp.float32)
        self.n2_g = 1.0 + 0.1 * jax.random.normal(ks[2], (dim,), jnp.float32)
        self.n2_b = 0.1 * jax.random.normal(ks[3], (dim,), jnp.float32)

        ah = self.all_head_dim
        # f32 master weights, stored pre-transposed as (in, out).
        self.w_qkv = init(ks[4], (dim, 3 * ah))
        if qkv_bias:
            q_bias = init(ks[5], (ah,))
            v_bias = init(ks[6], (ah,))
            # PyTorch: cat([q_bias, zeros_like(v_bias), v_bias])
            self.b_qkv = jnp.concatenate([q_bias, jnp.zeros_like(q_bias), v_bias])
        else:
            self.b_qkv = jnp.zeros((3 * ah,), jnp.float32)
        self.w_proj = init(ks[7], (ah, dim))
        self.b_proj = init(ks[8], (dim,))
        self.w_fc1 = init(ks[9], (dim, self.hidden))
        self.b_fc1 = init(ks[10], (self.hidden,))
        self.w_fc2 = init(ks[11], (self.hidden, dim))
        self.b_fc2 = init(ks[12], (dim,))

        # Kernel copies: bf16 weights; attention scale folded into q cols/bias.
        self.w_qkv_k = (self.w_qkv.at[:, :ah].multiply(self.scale)
                        ).astype(jnp.bfloat16)
        self.b_qkv_k = self.b_qkv.at[:ah].multiply(self.scale)     # f32
        self.w_proj_k = self.w_proj.astype(jnp.bfloat16)
        self.w_fc1_k = self.w_fc1.astype(jnp.bfloat16)
        self.w_fc2_k = self.w_fc2.astype(jnp.bfloat16)

        if init_values is not None and init_values > 0:
            self.gamma_1 = init_values * jnp.ones((dim,), jnp.float32)
            self.gamma_2 = init_values * jnp.ones((dim,), jnp.float32)
        else:
            self.gamma_1 = None
            self.gamma_2 = None

    def __call__(self, x):
        B, N, C = x.shape
        H, hd, ah = self.num_heads, self.head_dim, self.all_head_dim
        M = B * N
        x2 = x.reshape(M, C)
        ones_c = jnp.ones((C,), jnp.float32)
        g1 = self.gamma_1 if self.gamma_1 is not None else ones_c
        g2 = self.gamma_2 if self.gamma_2 is not None else ones_c

        # --- attention branch: fused LN1 + QKV projection (bf16 activations) -
        qkv = _ln_matmul_bias(x2, self.n1_g, self.n1_b, self.w_qkv_k,
                              self.b_qkv_k, eps=self.eps,
                              out_dtype=jnp.bfloat16)
        qkv = qkv.reshape(B, N, 3 * ah)                 # pure reshape, no transpose
        ao = _multihead_attention(qkv, H, hd)           # (B, N, ah) bf16
        ao = ao.reshape(M, ah)                          # pure reshape, no transpose
        # fused proj + gamma_1 + residual (f32 accumulate)
        x2 = _matmul_bias_residual(ao, self.w_proj_k, self.b_proj, g1, x2)

        # --- MLP branch: fused LN2 + FC1 + GELU (bf16 hidden) ----------------
        h = _ln_matmul_bias(x2, self.n2_g, self.n2_b, self.w_fc1_k,
                            self.b_fc1, act="gelu", eps=self.eps,
                            out_dtype=jnp.bfloat16)
        # fused FC2 + gamma_2 + residual (f32 accumulate)
        x2 = _matmul_bias_residual(h, self.w_fc2_k, self.b_fc2, g2, x2)
        return x2.reshape(B, N, C)


# -------------------------------- reference -------------------------------- #

def _reference_block(x, m: BlockPallas):
    """Pure-JAX f32 mirror of the PyTorch Block forward (eval, no dropout)."""
    def ln(t, g, b):
        mu = jnp.mean(t, axis=-1, keepdims=True)
        var = jnp.mean((t - mu) ** 2, axis=-1, keepdims=True)
        return (t - mu) / jnp.sqrt(var + m.eps) * g + b

    B, N, C = x.shape
    H, hd = m.num_heads, m.head_dim
    g1 = m.gamma_1 if m.gamma_1 is not None else 1.0
    g2 = m.gamma_2 if m.gamma_2 is not None else 1.0

    h = ln(x, m.n1_g, m.n1_b)
    qkv = h @ m.w_qkv + m.b_qkv                               # (B, N, 3*Ah)
    qkv = qkv.reshape(B, N, 3, H, hd).transpose(2, 0, 3, 1, 4)
    q, k, v = qkv[0] * m.scale, qkv[1], qkv[2]
    attn = q @ jnp.swapaxes(k, -2, -1)
    attn = jax.nn.softmax(attn, axis=-1)
    o = (attn @ v).transpose(0, 2, 1, 3).reshape(B, N, H * hd)
    o = o @ m.w_proj + m.b_proj
    x = x + g1 * o

    h = ln(x, m.n2_g, m.n2_b)
    mm = _gelu_tanh(h @ m.w_fc1 + m.b_fc1) @ m.w_fc2 + m.b_fc2
    x = x + g2 * mm
    return x


if __name__ == "__main__":
    key = jax.random.PRNGKey(0)
    xkey, pkey = jax.random.split(key)

    # Small demo shapes: batch=2, seq=16, dim=32, heads=4 (head_dim=8, mlp=128).
    B, N, dim, heads = 2, 16, 32, 4
    x = jax.random.normal(xkey, (B, N, dim), dtype=jnp.float32)

    block = BlockPallas(dim=dim, num_heads=heads, mlp_ratio=4.0,
                        qkv_bias=True, init_values=0.1, key=pkey)

    out = jax.jit(block.__call__)(x)
    out = jax.block_until_ready(out)

    ref = _reference_block(x, block)
    assert out.shape == ref.shape, (out.shape, ref.shape)
    max_err = float(jnp.max(jnp.abs(out - ref)))
    # bf16 matmul operands vs f32 reference -> loosened tolerance.
    assert max_err < 1e-2, f"max abs err {max_err}"

    print("KERNEL_OK")
</pallas_src>

<mosaic_0001>
module attributes {stable_mosaic.version = 11 : i64} {
  func.func @_attention_kernel(%arg0: i32, %arg1: i32, %arg2: memref<1x16x96xbf16, #tpu.memory_space<vmem>>, %arg3: memref<1x16x32xbf16, #tpu.memory_space<vmem>>) attributes {dimension_semantics = [#tpu.dimension_semantics<parallel>, #tpu.dimension_semantics<parallel>], iteration_bounds = array<i64: 2, 1>, scalar_prefetch = 0 : i64, scratch_operands = 0 : i64, tpu.core_type = #tpu.core_type<tc>, window_params = [{transform_indices = @transform_0, window_bounds = array<i64: 1, 16, 96>}, {transform_indices = @transform_1, window_bounds = array<i64: 1, 16, 32>}]} {
    %c16_i32 = arith.constant 16 : i32
    %0 = arith.muli %arg1, %c16_i32 : i32
    %1 = tpu.assume_multiple %0, 16 : i32
    %c0 = arith.constant 0 : index
    %2 = arith.index_cast %1 : i32 to index
    %c0_0 = arith.constant 0 : index
    %3 = vector.load %arg2[%c0, %2, %c0_0] : memref<1x16x96xbf16, #tpu.memory_space<vmem>>, vector<1x16x8xbf16>
    %4 = vector.shape_cast %3 : vector<1x16x8xbf16> to vector<16x8xbf16>
    %c0_1 = arith.constant 0 : index
    %c0_2 = arith.constant 0 : index
    %c32 = arith.constant 32 : index
    %5 = vector.load %arg2[%c0_1, %c0_2, %c32] : memref<1x16x96xbf16, #tpu.memory_space<vmem>>, vector<1x16x8xbf16>
    %6 = vector.shape_cast %5 : vector<1x16x8xbf16> to vector<16x8xbf16>
    %c0_3 = arith.constant 0 : index
    %c0_4 = arith.constant 0 : index
    %c64 = arith.constant 64 : index
    %7 = vector.load %arg2[%c0_3, %c0_4, %c64] : memref<1x16x96xbf16, #tpu.memory_space<vmem>>, vector<1x16x8xbf16>
    %8 = vector.shape_cast %7 : vector<1x16x8xbf16> to vector<16x8xbf16>
    %cst = arith.constant dense<0.000000e+00> : vector<16x16xf32>
    %9 = tpu.matmul %4, %6, %cst {dimension_numbers = #tpu.dot_dimension_numbers<[1], [1], [0], [0], [0, 0, 1, 0], [], []>} : vector<16x8xbf16>, vector<16x8xbf16>, vector<16x16xf32> -> vector<16x16xf32>
    %cst_5 = arith.constant dense<0xFF800000> : vector<16xf32>
    %10 = vector.multi_reduction <maximumf>, %9, %cst_5 [1] : vector<16x16xf32> to vector<16xf32>
    %11 = vector.shape_cast %10 : vector<16xf32> to vector<16x1xf32>
    %12 = vector.broadcast %11 : vector<16x1xf32> to vector<16x16xf32>
    %13 = arith.subf %9, %12 : vector<16x16xf32>
    %14 = math.exp %13 : vector<16x16xf32>
    %cst_6 = arith.constant dense<0.000000e+00> : vector<16xf32>
    %15 = vector.multi_reduction <add>, %14, %cst_6 [1] : vector<16x16xf32> to vector<16xf32>
    %16 = vector.shape_cast %15 : vector<16xf32> to vector<16x1xf32>
    %17 = tpu.reciprocal %16 {approx = true} : vector<16x1xf32> -> vector<16x1xf32>
    %18 = vector.broadcast %17 : vector<16x1xf32> to vector<16x16xf32>
    %19 = arith.mulf %14, %18 : vector<16x16xf32>
    %20 = arith.truncf %19 : vector<16x16xf32> to vector<16x16xbf16>
    %cst_7 = arith.constant dense<0.000000e+00> : vector<16x8xf32>
    %21 = tpu.matmul %20, %8, %cst_7 {dimension_numbers = #tpu.dot_dimension_numbers<[1], [0], [0], [1], [0, 0, 1, 1], [], []>} : vector<16x16xbf16>, vector<16x8xbf16>, vector<16x8xf32> -> vector<16x8xf32>
    %c0_8 = arith.constant 0 : index
    %22 = arith.index_cast %1 : i32 to index
    %c8 = arith.constant 8 : index
    %23 = vector.load %arg2[%c0_8, %22, %c8] : memref<1x16x96xbf16, #tpu.memory_space<vmem>>, vector<1x16x8xbf16>
    %24 = vector.shape_cast %23 : vector<1x16x8xbf16> to vector<16x8xbf16>
    %c0_9 = arith.constant 0 : index
    %c0_10 = arith.constant 0 : index
    %c40 = arith.constant 40 : index
    %25 = vector.load %arg2[%c0_9, %c0_10, %c40] : memref<1x16x96xbf16, #tpu.memory_space<vmem>>, vector<1x16x8xbf16>
    %26 = vector.shape_cast %25 : vector<1x16x8xbf16> to vector<16x8xbf16>
    %c0_11 = arith.constant 0 : index
    %c0_12 = arith.constant 0 : index
    %c72 = arith.constant 72 : index
    %27 = vector.load %arg2[%c0_11, %c0_12, %c72] : memref<1x16x96xbf16, #tpu.memory_space<vmem>>, vector<1x16x8xbf16>
    %28 = vector.shape_cast %27 : vector<1x16x8xbf16> to vector<16x8xbf16>
    %cst_13 = arith.constant dense<0.000000e+00> : vector<16x16xf32>
    %29 = tpu.matmul %24, %26, %cst_13 {dimension_numbers = #tpu.dot_dimension_numbers<[1], [1], [0], [0], [0, 0, 1, 0], [], []>} : vector<16x8xbf16>, vector<16x8xbf16>, vector<16x16xf32> -> vector<16x16xf32>
    %cst_14 = arith.constant dense<0xFF800000> : vector<16xf32>
    %30 = vector.multi_reduction <maximumf>, %29, %cst_14 [1] : vector<16x16xf32> to vector<16xf32>
    %31 = vector.shape_cast %30 : vector<16xf32> to vector<16x1xf32>
    %32 = vector.broadcast %31 : vector<16x1xf32> to vector<16x16xf32>
    %33 = arith.subf %29, %32 : vector<16x16xf32>
    %34 = math.exp %33 : vector<16x16xf32>
    %cst_15 = arith.constant dense<0.000000e+00> : vector<16xf32>
    %35 = vector.multi_reduction <add>, %34, %cst_15 [1] : vector<16x16xf32> to vector<16xf32>
    %36 = vector.shape_cast %35 : vector<16xf32> to vector<16x1xf32>
    %37 = tpu.reciprocal %36 {approx = true} : vector<16x1xf32> -> vector<16x1xf32>
    %38 = vector.broadcast %37 : vector<16x1xf32> to vector<16x16xf32>
    %39 = arith.mulf %34, %38 : vector<16x16xf32>
    %40 = arith.truncf %39 : vector<16x16xf32> to vector<16x16xbf16>
    %cst_16 = arith.constant dense<0.000000e+00> : vector<16x8xf32>
    %41 = tpu.matmul %40, %28, %cst_16 {dimension_numbers = #tpu.dot_dimension_numbers<[1], [0], [0], [1], [0, 0, 1, 1], [], []>} : vector<16x16xbf16>, vector<16x8xbf16>, vector<16x8xf32> -> vector<16x8xf32>
    %c0_17 = arith.constant 0 : index
    %42 = arith.index_cast %1 : i32 to index
    %c16 = arith.constant 16 : index
    %43 = vector.load %arg2[%c0_17, %42, %c16] : memref<1x16x96xbf16, #tpu.memory_space<vmem>>, vector<1x16x8xbf16>
    %44 = vector.shape_cast %43 : vector<1x16x8xbf16> to vector<16x8xbf16>
    %c0_18 = arith.constant 0 : index
    %c0_19 = arith.constant 0 : index
    %c48 = arith.constant 48 : index
    %45 = vector.load %arg2[%c0_18, %c0_19, %c48] : memref<1x16x96xbf16, #tpu.memory_space<vmem>>, vector<1x16x8xbf16>
    %46 = vector.shape_cast %45 : vector<1x16x8xbf16> to vector<16x8xbf16>
    %c0_20 = arith.constant 0 : index
    %c0_21 = arith.constant 0 : index
    %c80 = arith.constant 80 : index
    %47 = vector.load %arg2[%c0_20, %c0_21, %c80] : memref<1x16x96xbf16, #tpu.memory_space<vmem>>, vector<1x16x8xbf16>
    %48 = vector.shape_cast %47 : vector<1x16x8xbf16> to vector<16x8xbf16>
    %cst_22 = arith.constant dense<0.000000e+00> : vector<16x16xf32>
    %49 = tpu.matmul %44, %46, %cst_22 {dimension_numbers = #tpu.dot_dimension_numbers<[1], [1], [0], [0], [0, 0, 1, 0], [], []>} : vector<16x8xbf16>, vector<16x8xbf16>, vector<16x16xf32> -> vector<16x16xf32>
    %cst_23 = arith.constant dense<0xFF800000> : vector<16xf32>
    %50 = vector.multi_reduction <maximumf>, %49, %cst_23 [1] : vector<16x16xf32> to vector<16xf32>
    %51 = vector.shape_cast %50 : vector<16xf32> to vector<16x1xf32>
    %52 = vector.broadcast %51 : vector<16x1xf32> to vector<16x16xf32>
    %53 = arith.subf %49, %52 : vector<16x16xf32>
    %54 = math.exp %53 : vector<16x16xf32>
    %cst_24 = arith.constant dense<0.000000e+00> : vector<16xf32>
    %55 = vector.multi_reduction <add>, %54, %cst_24 [1] : vector<16x16xf32> to vector<16xf32>
    %56 = vector.shape_cast %55 : vector<16xf32> to vector<16x1xf32>
    %57 = tpu.reciprocal %56 {approx = true} : vector<16x1xf32> -> vector<16x1xf32>
    %58 = vector.broadcast %57 : vector<16x1xf32> to vector<16x16xf32>
    %59 = arith.mulf %54, %58 : vector<16x16xf32>
    %60 = arith.truncf %59 : vector<16x16xf32> to vector<16x16xbf16>
    %cst_25 = arith.constant dense<0.000000e+00> : vector<16x8xf32>
    %61 = tpu.matmul %60, %48, %cst_25 {dimension_numbers = #tpu.dot_dimension_numbers<[1], [0], [0], [1], [0, 0, 1, 1], [], []>} : vector<16x16xbf16>, vector<16x8xbf16>, vector<16x8xf32> -> vector<16x8xf32>
    %c0_26 = arith.constant 0 : index
    %62 = arith.index_cast %1 : i32 to index
    %c24 = arith.constant 24 : index
    %63 = vector.load %arg2[%c0_26, %62, %c24] : memref<1x16x96xbf16, #tpu.memory_space<vmem>>, vector<1x16x8xbf16>
    %64 = vector.shape_cast %63 : vector<1x16x8xbf16> to vector<16x8xbf16>
    %c0_27 = arith.constant 0 : index
    %c0_28 = arith.constant 0 : index
    %c56 = arith.constant 56 : index
    %65 = vector.load %arg2[%c0_27, %c0_28, %c56] : memref<1x16x96xbf16, #tpu.memory_space<vmem>>, vector<1x16x8xbf16>
    %66 = vector.shape_cast %65 : vector<1x16x8xbf16> to vector<16x8xbf16>
    %c0_29 = arith.constant 0 : index
    %c0_30 = arith.constant 0 : index
    %c88 = arith.constant 88 : index
    %67 = vector.load %arg2[%c0_29, %c0_30, %c88] : memref<1x16x96xbf16, #tpu.memory_space<vmem>>, vector<1x16x8xbf16>
    %68 = vector.shape_cast %67 : vector<1x16x8xbf16> to vector<16x8xbf16>
    %cst_31 = arith.constant dense<0.000000e+00> : vector<16x16xf32>
    %69 = tpu.matmul %64, %66, %cst_31 {dimension_numbers = #tpu.dot_dimension_numbers<[1], [1], [0], [0], [0, 0, 1, 0], [], []>} : vector<16x8xbf16>, vector<16x8xbf16>, vector<16x16xf32> -> vector<16x16xf32>
    %cst_32 = arith.constant dense<0xFF800000> : vector<16xf32>
    %70 = vector.multi_reduction <maximumf>, %69, %cst_32 [1] : vector<16x16xf32> to vector<16xf32>
    %71 = vector.shape_cast %70 : vector<16xf32> to vector<16x1xf32>
    %72 = vector.broadcast %71 : vector<16x1xf32> to vector<16x16xf32>
    %73 = arith.subf %69, %72 : vector<16x16xf32>
    %74 = math.exp %73 : vector<16x16xf32>
    %cst_33 = arith.constant dense<0.000000e+00> : vector<16xf32>
    %75 = vector.multi_reduction <add>, %74, %cst_33 [1] : vector<16x16xf32> to vector<16xf32>
    %76 = vector.shape_cast %75 : vector<16xf32> to vector<16x1xf32>
    %77 = tpu.reciprocal %76 {approx = true} : vector<16x1xf32> -> vector<16x1xf32>
    %78 = vector.broadcast %77 : vector<16x1xf32> to vector<16x16xf32>
    %79 = arith.mulf %74, %78 : vector<16x16xf32>
    %80 = arith.truncf %79 : vector<16x16xf32> to vector<16x16xbf16>
    %cst_34 = arith.constant dense<0.000000e+00> : vector<16x8xf32>
    %81 = tpu.matmul %80, %68, %cst_34 {dimension_numbers = #tpu.dot_dimension_numbers<[1], [0], [0], [1], [0, 0, 1, 1], [], []>} : vector<16x16xbf16>, vector<16x8xbf16>, vector<16x8xf32> -> vector<16x8xf32>
    %82 = tpu.concatenate %21, %41, %61, %81 in 1 : vector<16x8xf32>, vector<16x8xf32>, vector<16x8xf32>, vector<16x8xf32> -> vector<16x32xf32>
    %83 = arith.truncf %82 : vector<16x32xf32> to vector<16x32xbf16>
    %c0_35 = arith.constant 0 : index
    %c0_36 = arith.constant 0 : index
    %c0_37 = arith.constant 0 : index
    %84 = vector.load %arg3[%c0_35, %c0_36, %c0_37] : memref<1x16x32xbf16, #tpu.memory_space<vmem>>, vector<1x16x32xbf16>
    %85 = vector.shape_cast %84 : vector<1x16x32xbf16> to vector<16x32xbf16>
    %86 = vector.shape_cast %83 : vector<16x32xbf16> to vector<1x16x32xbf16>
    tpu.vector_store %arg3[%c0_35, %c0_36, %c0_37], %86 {strides = array<i32>} : memref<1x16x32xbf16, #tpu.memory_space<vmem>>, vector<1x16x32xbf16>,
    return
  }
  func.func @transform_0(%arg0: i32, %arg1: i32) -> (i32, i32, i32) {
    %c0_i32 = arith.constant 0 : i32
    %c0_i32_0 = arith.constant 0 : i32
    %c0_i32_1 = arith.constant 0 : i32
    return %arg0, %c0_i32, %c0_i32_0 : i32, i32, i32
  }
  func.func @transform_1(%arg0: i32, %arg1: i32) -> (i32, i32, i32) {
    %c0_i32 = arith.constant 0 : i32
    %c0_i32_0 = arith.constant 0 : i32
    return %arg0, %arg1, %c0_i32 : i32, i32, i32
  }
}

module attributes {stable_mosaic.version = 11 : i64} {
  func.func @_matmul_bias_res_kernel(%arg0: i32, %arg1: i32, %arg2: memref<32x32xbf16, #tpu.memory_space<vmem>>, %arg3: memref<32x32xbf16, #tpu.memory_space<vmem>>, %arg4: memref<1x32xf32, #tpu.memory_space<vmem>>, %arg5: memref<1x32xf32, #tpu.memory_space<vmem>>, %arg6: memref<32x32xf32, #tpu.memory_space<vmem>>, %arg7: memref<32x32xf32, #tpu.memory_space<vmem>>) attributes {dimension_semantics = [#tpu.dimension_semantics<parallel>, #tpu.dimension_semantics<parallel>], iteration_bounds = array<i64: 1, 1>, scalar_prefetch = 0 : i64, scratch_operands = 0 : i64, tpu.core_type = #tpu.core_type<tc>, window_params = [{transform_indices = @transform_0, window_bounds = array<i64: 32, 32>}, {pipeline_mode = #tpu.pipeline_mode<synchronous>, transform_indices = @transform_1, window_bounds = array<i64: 32, 32>}, {pipeline_mode = #tpu.pipeline_mode<synchronous>, transform_indices = @transform_2, window_bounds = array<i64: 1, 32>}, {pipeline_mode = #tpu.pipeline_mode<synchronous>, transform_indices = @transform_3, window_bounds = array<i64: 1, 32>}, {transform_indices = @transform_4, window_bounds = array<i64: 32, 32>}, {transform_indices = @transform_5, window_bounds = array<i64: 32, 32>}]} {
    %c0 = arith.constant 0 : index
    %c0_0 = arith.constant 0 : index
    %0 = vector.load %arg2[%c0, %c0_0] : memref<32x32xbf16, #tpu.memory_space<vmem>>, vector<32x32xbf16>
    %c0_1 = arith.constant 0 : index
    %c0_2 = arith.constant 0 : index
    %1 = vector.load %arg3[%c0_1, %c0_2] : memref<32x32xbf16, #tpu.memory_space<vmem>>, vector<32x32xbf16>
    %cst = arith.constant dense<0.000000e+00> : vector<32x32xf32>
    %2 = tpu.matmul %0, %1, %cst {dimension_numbers = #tpu.dot_dimension_numbers<[1], [0], [0], [1], [0, 0, 1, 1], [], []>} : vector<32x32xbf16>, vector<32x32xbf16>, vector<32x32xf32> -> vector<32x32xf32>
    %c0_3 = arith.constant 0 : index
    %c0_4 = arith.constant 0 : index
    %3 = vector.load %arg4[%c0_3, %c0_4] : memref<1x32xf32, #tpu.memory_space<vmem>>, vector<1x32xf32>
    %4 = vector.broadcast %3 : vector<1x32xf32> to vector<32x32xf32>
    %5 = arith.addf %2, %4 : vector<32x32xf32>
    %c0_5 = arith.constant 0 : index
    %c0_6 = arith.constant 0 : index
    %6 = vector.load %arg5[%c0_5, %c0_6] : memref<1x32xf32, #tpu.memory_space<vmem>>, vector<1x32xf32>
    %7 = vector.broadcast %6 : vector<1x32xf32> to vector<32x32xf32>
    %8 = arith.mulf %5, %7 : vector<32x32xf32>
    %c0_7 = arith.constant 0 : index
    %c0_8 = arith.constant 0 : index
    %9 = vector.load %arg6[%c0_7, %c0_8] : memref<32x32xf32, #tpu.memory_space<vmem>>, vector<32x32xf32>
    %10 = arith.addf %9, %8 : vector<32x32xf32>
    %c0_9 = arith.constant 0 : index
    %c0_10 = arith.constant 0 : index
    %11 = vector.load %arg7[%c0_9, %c0_10] : memref<32x32xf32, #tpu.memory_space<vmem>>, vector<32x32xf32>
    tpu.vector_store %arg7[%c0_9, %c0_10], %10 {strides = array<i32>} : memref<32x32xf32, #tpu.memory_space<vmem>>, vector<32x32xf32>,
    return
  }
  func.func @transform_0(%arg0: i32, %arg1: i32) -> (i32, i32) {
    %c0_i32 = arith.constant 0 : i32
    %c0_i32_0 = arith.constant 0 : i32
    return %arg1, %c0_i32 : i32, i32
  }
  func.func @transform_1(%arg0: i32, %arg1: i32) -> (i32, i32) {
    %c0_i32 = arith.constant 0 : i32
    %c0_i32_0 = arith.constant 0 : i32
    return %c0_i32, %arg0 : i32, i32
  }
  func.func @transform_2(%arg0: i32, %arg1: i32) -> (i32, i32) {
    %c0_i32 = arith.constant 0 : i32
    %c0_i32_0 = arith.constant 0 : i32
    return %c0_i32, %arg0 : i32, i32
  }
  func.func @transform_3(%arg0: i32, %arg1: i32) -> (i32, i32) {
    %c0_i32 = arith.constant 0 : i32
    %c0_i32_0 = arith.constant 0 : i32
    return %c0_i32, %arg0 : i32, i32
  }
  func.func @transform_4(%arg0: i32, %arg1: i32) -> (i32, i32) {
    %c0_i32 = arith.constant 0 : i32
    return %arg1, %arg0 : i32, i32
  }
  func.func @transform_5(%arg0: i32, %arg1: i32) -> (i32, i32) {
    %c0_i32 = arith.constant 0 : i32
    return %arg1, %arg0 : i32, i32
  }
}

module attributes {stable_mosaic.version = 11 : i64} {
  func.func @_ln_matmul_kernel(%arg0: i32, %arg1: i32, %arg2: memref<32x32xf32, #tpu.memory_space<vmem>>, %arg3: memref<1x32xf32, #tpu.memory_space<vmem>>, %arg4: memref<1x32xf32, #tpu.memory_space<vmem>>, %arg5: memref<32x96xbf16, #tpu.memory_space<vmem>>, %arg6: memref<1x96xf32, #tpu.memory_space<vmem>>, %arg7: memref<32x96xbf16, #tpu.memory_space<vmem>>) attributes {dimension_semantics = [#tpu.dimension_semantics<parallel>, #tpu.dimension_semantics<parallel>], iteration_bounds = array<i64: 1, 1>, scalar_prefetch = 0 : i64, scratch_operands = 0 : i64, tpu.core_type = #tpu.core_type<tc>, window_params = [{transform_indices = @transform_0, window_bounds = array<i64: 32, 32>}, {pipeline_mode = #tpu.pipeline_mode<synchronous>, transform_indices = @transform_1, window_bounds = array<i64: 1, 32>}, {pipeline_mode = #tpu.pipeline_mode<synchronous>, transform_indices = @transform_2, window_bounds = array<i64: 1, 32>}, {pipeline_mode = #tpu.pipeline_mode<synchronous>, transform_indices = @transform_3, window_bounds = array<i64: 32, 96>}, {pipeline_mode = #tpu.pipeline_mode<synchronous>, transform_indices = @transform_4, window_bounds = array<i64: 1, 96>}, {transform_indices = @transform_5, window_bounds = array<i64: 32, 96>}]} {
    %c0 = arith.constant 0 : index
    %c0_0 = arith.constant 0 : index
    %0 = vector.load %arg2[%c0, %c0_0] : memref<32x32xf32, #tpu.memory_space<vmem>>, vector<32x32xf32>
    %cst = arith.constant dense<0.000000e+00> : vector<32xf32>
    %1 = vector.multi_reduction <add>, %0, %cst [1] : vector<32x32xf32> to vector<32xf32>
    %2 = vector.shape_cast %1 : vector<32xf32> to vector<32x1xf32>
    %cst_1 = arith.constant 3.200000e+01 : f32
    %3 = vector.broadcast %cst_1 : f32 to vector<32x1xf32>
    %4 = arith.divf %2, %3 : vector<32x1xf32>
    %5 = vector.broadcast %4 : vector<32x1xf32> to vector<32x32xf32>
    %6 = arith.subf %0, %5 : vector<32x32xf32>
    %7 = arith.mulf %6, %6 : vector<32x32xf32>
    %cst_2 = arith.constant dense<0.000000e+00> : vector<32xf32>
    %8 = vector.multi_reduction <add>, %7, %cst_2 [1] : vector<32x32xf32> to vector<32xf32>
    %9 = vector.shape_cast %8 : vector<32xf32> to vector<32x1xf32>
    %cst_3 = arith.constant 3.200000e+01 : f32
    %10 = vector.broadcast %cst_3 : f32 to vector<32x1xf32>
    %11 = arith.divf %9, %10 : vector<32x1xf32>
    %cst_4 = arith.constant 9.99999974E-6 : f32
    %12 = vector.broadcast %cst_4 : f32 to vector<32x1xf32>
    %13 = arith.addf %11, %12 : vector<32x1xf32>
    %14 = math.rsqrt %13 : vector<32x1xf32>
    %15 = vector.broadcast %14 : vector<32x1xf32> to vector<32x32xf32>
    %16 = arith.mulf %6, %15 : vector<32x32xf32>
    %c0_5 = arith.constant 0 : index
    %c0_6 = arith.constant 0 : index
    %17 = vector.load %arg3[%c0_5, %c0_6] : memref<1x32xf32, #tpu.memory_space<vmem>>, vector<1x32xf32>
    %18 = vector.broadcast %17 : vector<1x32xf32> to vector<32x32xf32>
    %19 = arith.mulf %16, %18 : vector<32x32xf32>
    %c0_7 = arith.constant 0 : index
    %c0_8 = arith.constant 0 : index
    %20 = vector.load %arg4[%c0_7, %c0_8] : memref<1x32xf32, #tpu.memory_space<vmem>>, vector<1x32xf32>
    %21 = vector.broadcast %20 : vector<1x32xf32> to vector<32x32xf32>
    %22 = arith.addf %19, %21 : vector<32x32xf32>
    %23 = arith.truncf %22 : vector<32x32xf32> to vector<32x32xbf16>
    %c0_9 = arith.constant 0 : index
    %c0_10 = arith.constant 0 : index
    %24 = vector.load %arg5[%c0_9, %c0_10] : memref<32x96xbf16, #tpu.memory_space<vmem>>, vector<32x96xbf16>
    %cst_11 = arith.constant dense<0.000000e+00> : vector<32x96xf32>
    %25 = tpu.matmul %23, %24, %cst_11 {dimension_numbers = #tpu.dot_dimension_numbers<[1], [0], [0], [1], [0, 0, 1, 1], [], []>} : vector<32x32xbf16>, vector<32x96xbf16>, vector<32x96xf32> -> vector<32x96xf32>
    %c0_12 = arith.constant 0 : index
    %c0_13 = arith.constant 0 : index
    %26 = vector.load %arg6[%c0_12, %c0_13] : memref<1x96xf32, #tpu.memory_space<vmem>>, vector<1x96xf32>
    %27 = vector.broadcast %26 : vector<1x96xf32> to vector<32x96xf32>
    %28 = arith.addf %25, %27 : vector<32x96xf32>
    %29 = arith.truncf %28 : vector<32x96xf32> to vector<32x96xbf16>
    %c0_14 = arith.constant 0 : index
    %c0_15 = arith.constant 0 : index
    %30 = vector.load %arg7[%c0_14, %c0_15] : memref<32x96xbf16, #tpu.memory_space<vmem>>, vector<32x96xbf16>
    tpu.vector_store %arg7[%c0_14, %c0_15], %29 {strides = array<i32>} : memref<32x96xbf16, #tpu.memory_space<vmem>>, vector<32x96xbf16>,
    return
  }
  func.func @transform_0(%arg0: i32, %arg1: i32) -> (i32, i32) {
    %c0_i32 = arith.constant 0 : i32
    %c0_i32_0 = arith.constant 0 : i32
    return %arg1, %c0_i32 : i32, i32
  }
  func.func @transform_1(%arg0: i32, %arg1: i32) -> (i32, i32) {
    %c0_i32 = arith.constant 0 : i32
    %c0_i32_0 = arith.constant 0 : i32
    %c0_i32_1 = arith.constant 0 : i32
    return %c0_i32, %c0_i32_0 : i32, i32
  }
  func.func @transform_2(%arg0: i32, %arg1: i32) -> (i32, i32) {
    %c0_i32 = arith.constant 0 : i32
    %c0_i32_0 = arith.constant 0 : i32
    %c0_i32_1 = arith.constant 0 : i32
    return %c0_i32, %c0_i32_0 : i32, i32
  }
  func.func @transform_3(%arg0: i32, %arg1: i32) -> (i32, i32) {
    %c0_i32 = arith.constant 0 : i32
    %c0_i32_0 = arith.constant 0 : i32
    return %c0_i32, %arg0 : i32, i32
  }
  func.func @transform_4(%arg0: i32, %arg1: i32) -> (i32, i32) {
    %c0_i32 = arith.constant 0 : i32
    %c0_i32_0 = arith.constant 0 : i32
    return %c0_i32, %arg0 : i32, i32
  }
  func.func @transform_5(%arg0: i32, %arg1: i32) -> (i32, i32) {
    %c0_i32 = arith.constant 0 : i32
    return %arg1, %arg0 : i32, i32
  }
}

module attributes {stable_mosaic.version = 11 : i64} {
  func.func @_ln_matmul_kernel(%arg0: i32, %arg1: i32, %arg2: memref<32x32xf32, #tpu.memory_space<vmem>>, %arg3: memref<1x32xf32, #tpu.memory_space<vmem>>, %arg4: memref<1x32xf32, #tpu.memory_space<vmem>>, %arg5: memref<32x128xbf16, #tpu.memory_space<vmem>>, %arg6: memref<1x128xf32, #tpu.memory_space<vmem>>, %arg7: memref<32x128xbf16, #tpu.memory_space<vmem>>) attributes {dimension_semantics = [#tpu.dimension_semantics<parallel>, #tpu.dimension_semantics<parallel>], iteration_bounds = array<i64: 1, 1>, scalar_prefetch = 0 : i64, scratch_operands = 0 : i64, tpu.core_type = #tpu.core_type<tc>, window_params = [{transform_indices = @transform_0, window_bounds = array<i64: 32, 32>}, {pipeline_mode = #tpu.pipeline_mode<synchronous>, transform_indices = @transform_1, window_bounds = array<i64: 1, 32>}, {pipeline_mode = #tpu.pipeline_mode<synchronous>, transform_indices = @transform_2, window_bounds = array<i64: 1, 32>}, {pipeline_mode = #tpu.pipeline_mode<synchronous>, transform_indices = @transform_3, window_bounds = array<i64: 32, 128>}, {pipeline_mode = #tpu.pipeline_mode<synchronous>, transform_indices = @transform_4, window_bounds = array<i64: 1, 128>}, {transform_indices = @transform_5, window_bounds = array<i64: 32, 128>}]} {
    %c0 = arith.constant 0 : index
    %c0_0 = arith.constant 0 : index
    %0 = vector.load %arg2[%c0, %c0_0] : memref<32x32xf32, #tpu.memory_space<vmem>>, vector<32x32xf32>
    %cst = arith.constant dense<0.000000e+00> : vector<32xf32>
    %1 = vector.multi_reduction <add>, %0, %cst [1] : vector<32x32xf32> to vector<32xf32>
    %2 = vector.shape_cast %1 : vector<32xf32> to vector<32x1xf32>
    %cst_1 = arith.constant 3.200000e+01 : f32
    %3 = vector.broadcast %cst_1 : f32 to vector<32x1xf32>
    %4 = arith.divf %2, %3 : vector<32x1xf32>
    %5 = vector.broadcast %4 : vector<32x1xf32> to vector<32x32xf32>
    %6 = arith.subf %0, %5 : vector<32x32xf32>
    %7 = arith.mulf %6, %6 : vector<32x32xf32>
    %cst_2 = arith.constant dense<0.000000e+00> : vector<32xf32>
    %8 = vector.multi_reduction <add>, %7, %cst_2 [1] : vector<32x32xf32> to vector<32xf32>
    %9 = vector.shape_cast %8 : vector<32xf32> to vector<32x1xf32>
    %cst_3 = arith.constant 3.200000e+01 : f32
    %10 = vector.broadcast %cst_3 : f32 to vector<32x1xf32>
    %11 = arith.divf %9, %10 : vector<32x1xf32>
    %cst_4 = arith.constant 9.99999974E-6 : f32
    %12 = vector.broadcast %cst_4 : f32 to vector<32x1xf32>
    %13 = arith.addf %11, %12 : vector<32x1xf32>
    %14 = math.rsqrt %13 : vector<32x1xf32>
    %15 = vector.broadcast %14 : vector<32x1xf32> to vector<32x32xf32>
    %16 = arith.mulf %6, %15 : vector<32x32xf32>
    %c0_5 = arith.constant 0 : index
    %c0_6 = arith.constant 0 : index
    %17 = vector.load %arg3[%c0_5, %c0_6] : memref<1x32xf32, #tpu.memory_space<vmem>>, vector<1x32xf32>
    %18 = vector.broadcast %17 : vector<1x32xf32> to vector<32x32xf32>
    %19 = arith.mulf %16, %18 : vector<32x32xf32>
    %c0_7 = arith.constant 0 : index
    %c0_8 = arith.constant 0 : index
    %20 = vector.load %arg4[%c0_7, %c0_8] : memref<1x32xf32, #tpu.memory_space<vmem>>, vector<1x32xf32>
    %21 = vector.broadcast %20 : vector<1x32xf32> to vector<32x32xf32>
    %22 = arith.addf %19, %21 : vector<32x32xf32>
    %23 = arith.truncf %22 : vector<32x32xf32> to vector<32x32xbf16>
    %c0_9 = arith.constant 0 : index
    %c0_10 = arith.constant 0 : index
    %24 = vector.load %arg5[%c0_9, %c0_10] : memref<32x128xbf16, #tpu.memory_space<vmem>>, vector<32x128xbf16>
    %cst_11 = arith.constant dense<0.000000e+00> : vector<32x128xf32>
    %25 = tpu.matmul %23, %24, %cst_11 {dimension_numbers = #tpu.dot_dimension_numbers<[1], [0], [0], [1], [0, 0, 1, 1], [], []>} : vector<32x32xbf16>, vector<32x128xbf16>, vector<32x128xf32> -> vector<32x128xf32>
    %c0_12 = arith.constant 0 : index
    %c0_13 = arith.constant 0 : index
    %26 = vector.load %arg6[%c0_12, %c0_13] : memref<1x128xf32, #tpu.memory_space<vmem>>, vector<1x128xf32>
    %27 = vector.broadcast %26 : vector<1x128xf32> to vector<32x128xf32>
    %28 = arith.addf %25, %27 : vector<32x128xf32>
    %cst_14 = arith.constant 5.000000e-01 : f32
    %29 = vector.broadcast %cst_14 : f32 to vector<32x128xf32>
    %30 = arith.mulf %29, %28 : vector<32x128xf32>
    %cst_15 = arith.constant 4.471500e-02 : f32
    %31 = vector.broadcast %cst_15 : f32 to vector<32x128xf32>
    %32 = arith.mulf %31, %28 : vector<32x128xf32>
    %33 = arith.mulf %32, %28 : vector<32x128xf32>
    %34 = arith.mulf %33, %28 : vector<32x128xf32>
    %35 = arith.addf %28, %34 : vector<32x128xf32>
    %cst_16 = arith.constant 0.797884583 : f32
    %36 = vector.broadcast %cst_16 : f32 to vector<32x128xf32>
    %37 = arith.mulf %36, %35 : vector<32x128xf32>
    %38 = math.tanh %37 : vector<32x128xf32>
    %cst_17 = arith.constant 1.000000e+00 : f32
    %39 = vector.broadcast %cst_17 : f32 to vector<32x128xf32>
    %40 = arith.addf %39, %38 : vector<32x128xf32>
    %41 = arith.mulf %30, %40 : vector<32x128xf32>
    %42 = arith.truncf %41 : vector<32x128xf32> to vector<32x128xbf16>
    %c0_18 = arith.constant 0 : index
    %c0_19 = arith.constant 0 : index
    %43 = vector.load %arg7[%c0_18, %c0_19] : memref<32x128xbf16, #tpu.memory_space<vmem>>, vector<32x128xbf16>
    tpu.vector_store %arg7[%c0_18, %c0_19], %42 {strides = array<i32>} : memref<32x128xbf16, #tpu.memory_space<vmem>>, vector<32x128xbf16>,
    return
  }
  func.func @transform_0(%arg0: i32, %arg1: i32) -> (i32, i32) {
    %c0_i32 = arith.constant 0 : i32
    %c0_i32_0 = arith.constant 0 : i32
    return %arg1, %c0_i32 : i32, i32
  }
  func.func @transform_1(%arg0: i32, %arg1: i32) -> (i32, i32) {
    %c0_i32 = arith.constant 0 : i32
    %c0_i32_0 = arith.constant 0 : i32
    %c0_i32_1 = arith.constant 0 : i32
    return %c0_i32, %c0_i32_0 : i32, i32
  }
  func.func @transform_2(%arg0: i32, %arg1: i32) -> (i32, i32) {
    %c0_i32 = arith.constant 0 : i32
    %c0_i32_0 = arith.constant 0 : i32
    %c0_i32_1 = arith.constant 0 : i32
    return %c0_i32, %c0_i32_0 : i32, i32
  }
  func.func @transform_3(%arg0: i32, %arg1: i32) -> (i32, i32) {
    %c0_i32 = arith.constant 0 : i32
    %c0_i32_0 = arith.constant 0 : i32
    return %c0_i32, %arg0 : i32, i32
  }
  func.func @transform_4(%arg0: i32, %arg1: i32) -> (i32, i32) {
    %c0_i32 = arith.constant 0 : i32
    %c0_i32_0 = arith.constant 0 : i32
    return %c0_i32, %arg0 : i32, i32
  }
  func.func @transform_5(%arg0: i32, %arg1: i32) -> (i32, i32) {
    %c0_i32 = arith.constant 0 : i32
    return %arg1, %arg0 : i32, i32
  }
}

module attributes {stable_mosaic.version = 11 : i64} {
  func.func @_matmul_bias_res_kernel(%arg0: i32, %arg1: i32, %arg2: memref<32x128xbf16, #tpu.memory_space<vmem>>, %arg3: memref<128x32xbf16, #tpu.memory_space<vmem>>, %arg4: memref<1x32xf32, #tpu.memory_space<vmem>>, %arg5: memref<1x32xf32, #tpu.memory_space<vmem>>, %arg6: memref<32x32xf32, #tpu.memory_space<vmem>>, %arg7: memref<32x32xf32, #tpu.memory_space<vmem>>) attributes {dimension_semantics = [#tpu.dimension_semantics<parallel>, #tpu.dimension_semantics<parallel>], iteration_bounds = array<i64: 1, 1>, scalar_prefetch = 0 : i64, scratch_operands = 0 : i64, tpu.core_type = #tpu.core_type<tc>, window_params = [{transform_indices = @transform_0, window_bounds = array<i64: 32, 128>}, {pipeline_mode = #tpu.pipeline_mode<synchronous>, transform_indices = @transform_1, window_bounds = array<i64: 128, 32>}, {pipeline_mode = #tpu.pipeline_mode<synchronous>, transform_indices = @transform_2, window_bounds = array<i64: 1, 32>}, {pipeline_mode = #tpu.pipeline_mode<synchronous>, transform_indices = @transform_3, window_bounds = array<i64: 1, 32>}, {transform_indices = @transform_4, window_bounds = array<i64: 32, 32>}, {transform_indices = @transform_5, window_bounds = array<i64: 32, 32>}]} {
    %c0 = arith.constant 0 : index
    %c0_0 = arith.constant 0 : index
    %0 = vector.load %arg2[%c0, %c0_0] : memref<32x128xbf16, #tpu.memory_space<vmem>>, vector<32x128xbf16>
    %c0_1 = arith.constant 0 : index
    %c0_2 = arith.constant 0 : index
    %1 = vector.load %arg3[%c0_1, %c0_2] : memref<128x32xbf16, #tpu.memory_space<vmem>>, vector<128x32xbf16>
    %cst = arith.constant dense<0.000000e+00> : vector<32x32xf32>
    %2 = tpu.matmul %0, %1, %cst {dimension_numbers = #tpu.dot_dimension_numbers<[1], [0], [0], [1], [0, 0, 1, 1], [], []>} : vector<32x128xbf16>, vector<128x32xbf16>, vector<32x32xf32> -> vector<32x32xf32>
    %c0_3 = arith.constant 0 : index
    %c0_4 = arith.constant 0 : index
    %3 = vector.load %arg4[%c0_3, %c0_4] : memref<1x32xf32, #tpu.memory_space<vmem>>, vector<1x32xf32>
    %4 = vector.broadcast %3 : vector<1x32xf32> to vector<32x32xf32>
    %5 = arith.addf %2, %4 : vector<32x32xf32>
    %c0_5 = arith.constant 0 : index
    %c0_6 = arith.constant 0 : index
    %6 = vector.load %arg5[%c0_5, %c0_6] : memref<1x32xf32, #tpu.memory_space<vmem>>, vector<1x32xf32>
    %7 = vector.broadcast %6 : vector<1x32xf32> to vector<32x32xf32>
    %8 = arith.mulf %5, %7 : vector<32x32xf32>
    %c0_7 = arith.constant 0 : index
    %c0_8 = arith.constant 0 : index
    %9 = vector.load %arg6[%c0_7, %c0_8] : memref<32x32xf32, #tpu.memory_space<vmem>>, vector<32x32xf32>
    %10 = arith.addf %9, %8 : vector<32x32xf32>
    %c0_9 = arith.constant 0 : index
    %c0_10 = arith.constant 0 : index
    %11 = vector.load %arg7[%c0_9, %c0_10] : memref<32x32xf32, #tpu.memory_space<vmem>>, vector<32x32xf32>
    tpu.vector_store %arg7[%c0_9, %c0_10], %10 {strides = array<i32>} : memref<32x32xf32, #tpu.memory_space<vmem>>, vector<32x32xf32>,
    return
  }
  func.func @transform_0(%arg0: i32, %arg1: i32) -> (i32, i32) {
    %c0_i32 = arith.constant 0 : i32
    %c0_i32_0 = arith.constant 0 : i32
    return %arg1, %c0_i32 : i32, i32
  }
  func.func @transform_1(%arg0: i32, %arg1: i32) -> (i32, i32) {
    %c0_i32 = arith.constant 0 : i32
    %c0_i32_0 = arith.constant 0 : i32
    return %c0_i32, %arg0 : i32, i32
  }
  func.func @transform_2(%arg0: i32, %arg1: i32) -> (i32, i32) {
    %c0_i32 = arith.constant 0 : i32
    %c0_i32_0 = arith.constant 0 : i32
    return %c0_i32, %arg0 : i32, i32
  }
  func.func @transform_3(%arg0: i32, %arg1: i32) -> (i32, i32) {
    %c0_i32 = arith.constant 0 : i32
    %c0_i32_0 = arith.constant 0 : i32
    return %c0_i32, %arg0 : i32, i32
  }
  func.func @transform_4(%arg0: i32, %arg1: i32) -> (i32, i32) {
    %c0_i32 = arith.constant 0 : i32
    return %arg1, %arg0 : i32, i32
  }
  func.func @transform_5(%arg0: i32, %arg1: i32) -> (i32, i32) {
    %c0_i32 = arith.constant 0 : i32
    return %arg1, %arg0 : i32, i32
  }
}

</mosaic_0001>

<bundles_post_ra>
// kernel: a_call__.7
= control target key start
LH: loop header
LB: loop body
LE: loop exit
PB: predicated region body
PF: predicated region fallthrough
CT: control target
= control target key end

     0   :  { %vm58_vm0 = vcmask 261120   ;;  %s243_s1 = inlined_call_operand.vmem [shape: bf16[32,32], index: 1, kind: input, shape index: {}]   ;;  %s244_s0 = inlined_call_operand.vmem [shape: bf16[32,32], index: 0, kind: input, shape index: {}]   ;;  %s245_s2 = inlined_call_operand.vmem [shape: f32[1,32], index: 2, kind: input, shape index: {}]   ;;  %s246_s3 = inlined_call_operand.vmem [shape: f32[1,32], index: 3, kind: input, shape index: {}]   ;;  %s247_s4 = inlined_call_operand.vmem [shape: f32[32,32], index: 4, kind: input, shape index: {}]   ;;  %s248_s5 = inlined_call_operand.vmem [shape: f32[32,32], index: 5, kind: output, shape index: {}]  }
   0x1   :  { %v161_v0 = vld [vmem:[%s243_s1] sm:$0xff]   ;;  %v162_v1 = vld [vmem:[%s243_s1 + $0x8] sm:$0xff]   ;;  %v127_v9 = vld [vmem:[%s247_s4 + $0x10] sm:$0xff] }
   0x2   :  { %153 = vmatprep.subr.bf16.mxu0 %v161_v0  ;;  %v163_v2 = vld [vmem:[%s244_s0] sm:$0xff]   ;;  %v164_v3 = vld [vmem:[%s244_s0 + $0x8] sm:$0xff]   ;;  %v128_v17 = vld [vmem:[%s247_s4 + $0x18] sm:$0xff] }
   0x3   :  { %154 = vmatpush3.bf16.msra.mxu0 %v161_v0  ;;  %157 = vmatprep.mubr.msk.bf16.mxu0 %vm58_vm0, %v163_v2  ;;  %v141_v4 = vld [vmem:[%s245_s2] ss:$0 sm:$0xff]  ;;  %v126_v21 = vld [vmem:[%s247_s4 + $0x8] sm:$0xff] }
   0x4   :  { %155 = vmatprep.subr.bf16.mxu0 %v162_v1  ;;  %v148_v6 = vld [vmem:[%s246_s3] ss:$0 sm:$0xff] }
   0x5   :  { %v125_v13 = vld [vmem:[%s247_s4] sm:$0xff] }
   0x7   :  { %156 = vmatpush3.bf16.msra.mxu0 %v162_v1 }
   0xa   :  { %158 = vmatmul.mubr.msk.bf16.vlgmr.msra.gmra.mrb[0].mxu0 %vm58_vm0, %v164_v3 }
  0xdd   :  { %v159_v5 = vpop.f32.mrb[0].mxu0 }
  0xde   :  { %v108_v7 = vadd.f32 %v159_v5, %v141_v4  ;;  %v99_v8 = vpop.f32.mrb[1].mxu0 }
  0xdf   :  { %v100_v10 = vadd.f32 %v141_v4, %v99_v8  ;;  %v160_v11 = vpop.f32.mrb[2].mxu0 }
  0xe0   :  { %v123_v12 = vmul.f32 %v148_v6, %v108_v7  ;;  %v111_v14 = vadd.f32 %v160_v11, %v141_v4  ;;  %v102_v15 = vpop.f32.mrb[3].mxu0 }
  0xe1   :  { %v121_v16 = vmul.f32 %v148_v6, %v100_v10  ;;  %v103_v18 = vadd.f32 %v141_v4, %v102_v15 }
  0xe2   :  { %v131_v19 = vadd.f32 %v127_v9, %v123_v12  ;;  %v124_v20 = vmul.f32 %v148_v6, %v111_v14 }
  0xe3   :  { %v129_v22 = vadd.f32 %v125_v13, %v121_v16  ;;  %v122_v23 = vmul.f32 %v148_v6, %v103_v18 }
  0xe4   :  { %135 = vst.msk [vmem:[%s248_s5 + $0x10] sm:$0xff] %vm58_vm0, %v131_v19  ;;  %v132_v24 = vadd.f32 %v128_v17, %v124_v20 }
  0xe5   :  { %133 = vst.msk [vmem:[%s248_s5] sm:$0xff] %vm58_vm0, %v129_v22  ;;  %v130_v25 = vadd.f32 %v126_v21, %v122_v23 }
  0xe6   :  { %136 = vst.msk [vmem:[%s248_s5 + $0x18] sm:$0xff] %vm58_vm0, %v132_v24 }
  0xe7   :  { %134 = vst.msk [vmem:[%s248_s5 + $0x8] sm:$0xff] %vm58_vm0, %v130_v25 }

// kernel: a_call__.6
= control target key start
LH: loop header
LB: loop body
LE: loop exit
PB: predicated region body
PF: predicated region fallthrough
CT: control target
= control target key end

     0   :  { %s999_s6 = smov 0   ;;  %s1001_s7 = smov 0   ;;  %s1111_s0 = inlined_call_operand.vmem [shape: bf16[2,16,96], index: 0, kind: input, shape index: {}]   ;;  %s1112_s1 = inlined_call_operand.vmem [shape: bf16[2,16,32], index: 1, kind: output, shape index: {}]  }
   0x1   :  { %s1003_s8 = smov 0  }
   0x2 LB: > { %s23_s9 = sadd.s32 1, %s967_s7  ;;  %p773_p0 = scmp.ge.s32.totalorder %s971_s8, 1  ;;  %s971_s8 = sphi %s1003_s8, %s11_s8   ;;  %s967_s7 = sphi %s1001_s7, %s1114_s7   ;;  %s963_s6 = sphi %s999_s6, %s1113_s6  }
   0x3   : > { %p25_p1 = scmp.ge.s32.totalorder %s23_s9, 2  ;;  %p101_p2 = scmp.lt.s32.totalorder %s971_s8, 3 }
   0x5   : > { %s1116_s9 = smov (%p25_p1, %s23_s9), 0  ;;  %p102_p3 = pnand %p773_p0, %p101_p2 }
   0x6   : > { %p125_p4 = scmp.lt.s32.totalorder (!%p102_p3), %s963_s6, 1  ;;  %v973_v0 = vmov (!%p102_p3), 0.0   ;;  %vm974_vm0 = vmmov (!%p102_p3), 0   ;;  %s975_s14 = smov (!%p102_p3), 96   ;;  %vm162_vm1 = vcmask (!%p102_p3), 64512   ;;  %vm210_vm2 = vcmask (!%p102_p3), 130048  }
   0x7   : > { %105 = sbr.rel (%p102_p3) target bundleno = 1564 (0x61c), region = 24  ;;  %812 = vmatprep.subr.bf16.mxu0 (!%p102_p3), %v973_v0  ;;  %814 = vmatprep.mubr.msk.bf16.mxu0 (!%p102_p3), %vm974_vm0, %v973_v0  ;;  %s976_s15 = smov (!%p102_p3), 64   ;;  %vm672_vm3 = vcmask (!%p102_p3), 195584   ;;  %vm683_vm4 = vcmask (!%p102_p3), 257024  }
   0x8   : > { %818 = vmatprep.subr.bf16.mxu1 (!%p102_p3), %v973_v0  ;;  %820 = vmatprep.mubr.msk.bf16.mxu1 (!%p102_p3), %vm974_vm0, %v973_v0  ;;  %s977_s16 = smov (!%p102_p3), 80   ;;  %s978_s17 = smov (!%p102_p3), 88  }
   0x9   : > { %s979_s18 = smov (!%p102_p3), 120   ;;  %s980_s19 = smov (!%p102_p3), 112  }
   0xa   : > { %s981_s20 = smov (!%p102_p3), 72   ;;  %s982_s21 = smov (!%p102_p3), 104  }
   0xb   : > { %s983_s22 = smov (!%p102_p3), 56   ;;  %s984_s23 = smov (!%p102_p3), 40  }
   0xc   : > { %s985_s24 = smov (!%p102_p3), 48   ;;  %s986_s25 = smov (!%p102_p3), 8  }
   0xd   : > { %s987_s26 = smov (!%p102_p3), 16   ;;  %s988_s27 = smov (!%p102_p3), 24  }
   0xe   : > { %s1118_s6 = smov (!%p125_p4, %s963_s6), 1 }
   0xf   : > { %s792_s10 = sshll.u32 %s1118_s6, 3 }
  0x10   : > { %s129_s13 = scalar_lea.vmem %s1111_s0, %s792_s10  ;;  %s138_s30 = scalar_lea.vmem %s1112_s1, %s792_s10 }
  0x11   : > { %v1031_v1 = vld [vmem:[%s129_s13] sm:$0xff]  }
  0x12   : > { %160 = vrot.lane.b32.xlu0 %v1031_v1, %s975_s14  ;;  %v916_v4 = vld [vmem:[%s129_s13] sm:$0xff]  }
  0x84   : > { %v161_v2 = vpop.permute.xlu0 %160 }
  0x85   : > { %v167_v3 = vsel %vm162_vm1, %v161_v2, 0 }
  0x86   : > { %813 = vmatpush3.bf16.xpose.msra.mxu0 %v167_v3 }
  0x87   : > { %830 = vmatprep.subr.bf16.mxu0 %v973_v0 }
  0x8d   : > { %815 = vmatmul.mubr.msk.bf16.vlgmr.msra.gmra.mrb[0].mxu0 %vm162_vm1, %v916_v4 }
  0x8e   : > { %832 = vmatprep.mubr.msk.bf16.mxu0 %vm974_vm0, %v973_v0 }
 0x160   : > { %v203_v5 = vpop.f32.mrb[0].mxu0 }
 0x161   : > { %v816_v6 = vpop.f32.mrb[1].mxu0  ;;  %v211_v7 = vsel %vm210_vm2, %v203_v5, -inf }
 0x162   : > { %212 = vmax.xlane.f32.xlu0 %v211_v7  ;;  %v206_v8 = vpop.f32.mrb[2].mxu0 }
 0x163   : > { %v817_v9 = vpop.f32.mrb[3].mxu0  ;;  %v214_v10 = vsel %vm210_vm2, %v206_v8, -inf }
 0x164   : > { %215 = vmax.xlane.f32.xlu1 %v214_v10 }
 0x175   : > { %234 = vrot.lane.b32.xlu1 %v1031_v1, %s976_s15 }
 0x178   : > { %404 = vrot.lane.b32.xlu0 %v1031_v1, %s977_s16 }
 0x1ef   : > { %v213_v11 = vpop.xlane.xlu0 %212 }
 0x1f0   : > { %v217_v12 = vsub.f32 %v203_v5, %v213_v11 }
 0x1f1   : > { %v216_v13 = vpop.xlane.xlu1 %215 }
 0x1f2   : > { %v219_v14 = vmul.f32 1.442695, %v217_v12  ;;  %v218_v15 = vsub.f32 %v206_v8, %v216_v13 }
 0x1f3   : > { %v405_v32 = vpop.permute.xlu0 %404 }
 0x1f4   : > { %917 = vpow2.f32 %v219_v14  ;;  %v221_v16 = vmul.f32 1.442695, %v218_v15  ;;  %v410_v34 = vsel %vm162_vm1, %v405_v32, 0 }
 0x1f5   : > { %v235_v17 = vpop.permute.xlu1 %234 }
 0x1f6   : > { %919 = vpow2.f32 %v221_v16  ;;  %819 = vmatpush3.bf16.msra.mxu1 %v235_v17 }
 0x1f7   : > { %824 = vmatprep.subr.bf16.mxu1 %v973_v0 }
 0x1fe   : > { %v918_v18 = vpop.eup %917 }
 0x1ff   : > { %v223_v19 = vsel %vm210_vm2, %v918_v18, 0.0 }
 0x200   : > { %v920_v20 = vpop.eup %919  ;;  %224 = vadd.xlane.f32.xlu1 %v223_v19 }
 0x201   : > { %v226_v21 = vsel %vm210_vm2, %v920_v20, 0.0 }
 0x204   : > { %227 = vadd.xlane.f32.xlu1 %v226_v21 }
 0x215   : > { %283 = vrot.lane.b32.xlu1 %v1031_v1, %s978_s17 }
 0x219   : > { %281 = vrot.lane.b32.xlu1 %v916_v4, %s979_s18 }
 0x21d   : > { %402 = vrot.lane.b32.xlu1 %v916_v4, %s980_s19 }
 0x221   : > { %525 = vrot.lane.b32.xlu1 %v1031_v1, %s981_s20 }
 0x225   : > { %523 = vrot.lane.b32.xlu1 %v916_v4, %s982_s21 }
 0x28d   : > { %v225_v22 = vpop.xlane.xlu1 %224 }
 0x28e   : > { %921 = vrcp.f32 %v225_v22 }
 0x291   : > { %v228_v23 = vpop.xlane.xlu1 %227 }
 0x292   : > { %923 = vrcp.f32 %v228_v23 }
 0x295   : > { %v284_v26 = vpop.permute.xlu1 %283 }
 0x296   : > { %v289_v29 = vsel %vm162_vm1, %v284_v26, 0 }
 0x298   : > { %v922_v24 = vpop.eup %921 }
 0x299   : > { %v231_v27 = vmul.f32 %v922_v24, %v918_v18  ;;  %v282_v31 = vpop.permute.xlu1 %281 }
 0x29c   : > { %v924_v25 = vpop.eup %923 }
 0x29d   : > { %v232_v28 = vmul.f32 %v924_v25, %v920_v20  ;;  %v403_v33 = vpop.permute.xlu1 %402 }
 0x29f   : > { %v233_v30 = vpack.c.bf16 %v232_v28, %v231_v27 }
 0x2a1   : > { %821 = vmatmul.mubr.msk.bf16.vlgmr.msra.gmra.mrb[0].mxu1 %vm210_vm2, %v233_v30  ;;  %v526_v35 = vpop.permute.xlu1 %525 }
 0x2a2   : > { %825 = vmatpush3.bf16.xpose.msra.mxu1 %v289_v29  ;;  %826 = vmatprep.mubr.msk.bf16.mxu1 %vm974_vm0, %v973_v0  ;;  %v531_v36 = vsel %vm162_vm1, %v526_v35, 0 }
 0x2a3   : > { %836 = vmatprep.subr.bf16.mxu1 %v973_v0 }
 0x2a5   : > { %v524_v37 = vpop.permute.xlu1 %523 }
 0x2a9   : > { %827 = vmatmul.mubr.msk.bf16.vlgmr.msra.gmra.mrb[4].mxu1 %vm162_vm1, %v282_v31 }
 0x2aa   : > { %837 = vmatpush3.bf16.xpose.msra.mxu1 %v410_v34  ;;  %838 = vmatprep.mubr.msk.bf16.mxu1 %vm974_vm0, %v973_v0 }
 0x2ab   : > { %848 = vmatprep.subr.bf16.mxu1 %v973_v0 }
 0x2b1   : > { %839 = vmatmul.mubr.msk.bf16.vlgmr.msra.gmra.mrb[8].mxu1 %vm162_vm1, %v403_v33 }
 0x2b2   : > { %849 = vmatpush3.bf16.xpose.msra.mxu1 %v531_v36  ;;  %850 = vmatprep.mubr.msk.bf16.mxu1 %vm974_vm0, %v973_v0 }
 0x2b9   : > { %851 = vmatmul.mubr.msk.bf16.vlgmr.msra.gmra.mrb[12].mxu1 %vm162_vm1, %v524_v37 }
 0x374   : > { %v1063_v38 = vpop.f32.mrb[0].mxu1 }
 0x375   : > { %v822_v39 = vpop.f32.mrb[1].mxu1 }
 0x376   : > { %v1065_v40 = vpop.f32.mrb[2].mxu1 }
 0x377   : > { %v823_v41 = vpop.f32.mrb[3].mxu1 }
 0x37c   : > { %v325_v42 = vpop.f32.mrb[4].mxu1 }
 0x37d   : > { %v828_v43 = vpop.f32.mrb[5].mxu1  ;;  %v332_v44 = vsel %vm210_vm2, %v325_v42, -inf }
 0x37e   : > { %333 = vmax.xlane.f32.xlu1 %v332_v44  ;;  %v328_v45 = vpop.f32.mrb[6].mxu1 }
 0x37f   : > { %v829_v46 = vpop.f32.mrb[7].mxu1  ;;  %v335_v47 = vsel %vm210_vm2, %v328_v45, -inf }
 0x380   : > { %336 = vmax.xlane.f32.xlu0 %v335_v47 }
 0x384   : > { %v446_v48 = vpop.f32.mrb[8].mxu1 }
 0x385   : > { %v840_v49 = vpop.f32.mrb[9].mxu1  ;;  %v453_v50 = vsel %vm210_vm2, %v446_v48, -inf }
 0x386   : > { %454 = vmax.xlane.f32.xlu1 %v453_v50  ;;  %v449_v51 = vpop.f32.mrb[10].mxu1 }
 0x387   : > { %v841_v52 = vpop.f32.mrb[11].mxu1  ;;  %v456_v53 = vsel %vm210_vm2, %v449_v51, -inf }
 0x388   : > { %457 = vmax.xlane.f32.xlu0 %v456_v53 }
 0x38c   : > { %v567_v54 = vpop.f32.mrb[12].mxu1 }
 0x38d   : > { %v852_v55 = vpop.f32.mrb[13].mxu1  ;;  %v574_v56 = vsel %vm210_vm2, %v567_v54, -inf }
 0x38e   : > { %575 = vmax.xlane.f32.xlu1 %v574_v56  ;;  %v570_v57 = vpop.f32.mrb[14].mxu1 }
 0x38f   : > { %v853_v58 = vpop.f32.mrb[15].mxu1  ;;  %v577_v59 = vsel %vm210_vm2, %v570_v57, -inf }
 0x390   : > { %578 = vmax.xlane.f32.xlu0 %v577_v59 }
 0x39f   : > { %355 = vrot.lane.b32.xlu1 %v1031_v1, %s983_s22 }
 0x40b   : > { %v334_v60 = vpop.xlane.xlu1 %333 }
 0x40c   : > { %v338_v61 = vsub.f32 %v325_v42, %v334_v60 }
 0x40d   : > { %v337_v62 = vpop.xlane.xlu0 %336 }
 0x40e   : > { %v340_v63 = vmul.f32 1.442695, %v338_v61  ;;  %v339_v2 = vsub.f32 %v328_v45, %v337_v62 }
 0x410   : > { %925 = vpow2.f32 %v340_v63  ;;  %v342_v3 = vmul.f32 1.442695, %v339_v2 }
 0x412   : > { %927 = vpow2.f32 %v342_v3 }
 0x413   : > { %v455_v4 = vpop.xlane.xlu1 %454 }
 0x414   : > { %v459_v5 = vsub.f32 %v446_v48, %v455_v4 }
 0x415   : > { %v458_v6 = vpop.xlane.xlu0 %457 }
 0x416   : > { %v461_v7 = vmul.f32 1.442695, %v459_v5  ;;  %v460_v8 = vsub.f32 %v449_v51, %v458_v6 }
 0x418   : > { %929 = vpow2.f32 %v461_v7  ;;  %v463_v9 = vmul.f32 1.442695, %v460_v8 }
 0x41a   : > { %v926_v10 = vpop.eup %925  ;;  %931 = vpow2.f32 %v463_v9 }
 0x41b   : > { %v576_v11 = vpop.xlane.xlu1 %575  ;;  %v344_v12 = vsel %vm210_vm2, %v926_v10, 0.0 }
 0x41c   : > { %v928_v13 = vpop.eup %927  ;;  %v580_v14 = vsub.f32 %v567_v54, %v576_v11  ;;  %345 = vadd.xlane.f32.xlu1 %v344_v12 }
 0x41d   : > { %v579_v15 = vpop.xlane.xlu0 %578  ;;  %v347_v16 = vsel %vm210_vm2, %v928_v13, 0.0 }
 0x41e   : > { %v582_v17 = vmul.f32 1.442695, %v580_v14  ;;  %v581_v18 = vsub.f32 %v570_v57, %v579_v15  ;;  %348 = vadd.xlane.f32.xlu0 %v347_v16 }
 0x41f   : > { %v356_v19 = vpop.permute.xlu1 %355 }
 0x420   : > { %933 = vpow2.f32 %v582_v17  ;;  %v584_v20 = vmul.f32 1.442695, %v581_v18  ;;  %831 = vmatpush3.bf16.msra.mxu0 %v356_v19 }
 0x421   : > { %842 = vmatprep.subr.bf16.mxu0 %v973_v0 }
 0x422   : > { %v930_v21 = vpop.eup %929  ;;  %935 = vpow2.f32 %v584_v20 }
 0x423   : > { %v465_v22 = vsel %vm210_vm2, %v930_v21, 0.0 }
 0x424   : > { %v932_v23 = vpop.eup %931  ;;  %466 = vadd.xlane.f32.xlu1 %v465_v22 }
 0x425   : > { %v468_v24 = vsel %vm210_vm2, %v932_v23, 0.0 }
 0x426   : > { %469 = vadd.xlane.f32.xlu0 %v468_v24 }
 0x42a   : > { %v934_v25 = vpop.eup %933 }
 0x42b   : > { %v586_v26 = vsel %vm210_vm2, %v934_v25, 0.0 }
 0x42c   : > { %v936_v27 = vpop.eup %935  ;;  %587 = vadd.xlane.f32.xlu1 %v586_v26 }
 0x42d   : > { %v589_v28 = vsel %vm210_vm2, %v936_v27, 0.0 }
 0x42e   : > { %590 = vadd.xlane.f32.xlu0 %v589_v28 }
 0x43d   : > { %597 = vrot.lane.b32.xlu1 %v1031_v1, %s984_s23 }
 0x444   : > { %476 = vrot.lane.b32.xlu0 %v1031_v1, %s985_s24 }
 0x4a9   : > { %v346_v29 = vpop.xlane.xlu1 %345 }
 0x4aa   : > { %937 = vrcp.f32 %v346_v29 }
 0x4ab   : > { %v349_v30 = vpop.xlane.xlu0 %348 }
 0x4ac   : > { %939 = vrcp.f32 %v349_v30 }
 0x4b1   : > { %v467_v31 = vpop.xlane.xlu1 %466 }
 0x4b2   : > { %941 = vrcp.f32 %v467_v31 }
 0x4b3   : > { %v470_v32 = vpop.xlane.xlu0 %469 }
 0x4b4   : > { %v938_v33 = vpop.eup %937  ;;  %943 = vrcp.f32 %v470_v32 }
 0x4b5   : > { %v352_v35 = vmul.f32 %v938_v33, %v926_v10 }
 0x4b6   : > { %v940_v34 = vpop.eup %939 }
 0x4b7   : > { %v353_v36 = vmul.f32 %v940_v34, %v928_v13 }
 0x4b9   : > { %v588_v37 = vpop.xlane.xlu1 %587  ;;  %v354_v39 = vpack.c.bf16 %v353_v36, %v352_v35 }
 0x4ba   : > { %945 = vrcp.f32 %v588_v37 }
 0x4bb   : > { %v591_v41 = vpop.xlane.xlu0 %590  ;;  %833 = vmatmul.mubr.msk.bf16.vlgmr.msra.gmra.mrb[4].mxu0 %vm210_vm2, %v354_v39 }
 0x4bc   : > { %v942_v42 = vpop.eup %941  ;;  %947 = vrcp.f32 %v591_v41  ;;  %844 = vmatprep.mubr.msk.bf16.mxu0 %vm974_vm0, %v973_v0 }
 0x4bd   : > { %v473_v43 = vmul.f32 %v942_v42, %v930_v21  ;;  %v598_v47 = vpop.permute.xlu1 %597 }
 0x4be   : > { %v944_v1 = vpop.eup %943 }
 0x4bf   : > { %v474_v44 = vmul.f32 %v944_v1, %v932_v23  ;;  %v477_v45 = vpop.permute.xlu0 %476 }
 0x4c0   : > { %843 = vmatpush3.bf16.msra.mxu0 %v477_v45 }
 0x4c1   : > { %v475_v46 = vpack.c.bf16 %v474_v44, %v473_v43  ;;  %854 = vmatprep.subr.bf16.mxu0 %v973_v0 }
 0x4c3   : > { %845 = vmatmul.mubr.msk.bf16.vlgmr.msra.gmra.mrb[8].mxu0 %vm210_vm2, %v475_v46 }
 0x4c4   : > { %v946_v48 = vpop.eup %945  ;;  %855 = vmatpush3.bf16.msra.mxu0 %v598_v47  ;;  %856 = vmatprep.mubr.msk.bf16.mxu0 %vm974_vm0, %v973_v0 }
 0x4c5   : > { %v594_v50 = vmul.f32 %v946_v48, %v934_v25 }
 0x4c6   : > { %v948_v49 = vpop.eup %947 }
 0x4c7   : > { %v595_v51 = vmul.f32 %v948_v49, %v936_v27 }
 0x4c9   : > { %v596_v52 = vpack.c.bf16 %v595_v51, %v594_v50 }
 0x4cb   : > { %857 = vmatmul.mubr.msk.bf16.vlgmr.msra.gmra.mrb[12].mxu0 %vm210_vm2, %v596_v52 }
 0x58e   : > { %v395_v53 = vpop.f32.mrb[4].mxu0 }
 0x58f   : > { %v834_v54 = vpop.f32.mrb[5].mxu0 }
 0x590   : > { %v398_v55 = vpop.f32.mrb[6].mxu0 }
 0x591   : > { %v900_v56 = vpack.i.bf16 %v398_v55, %v395_v53  ;;  %v835_v57 = vpop.f32.mrb[7].mxu0 }
 0x593   : > { %901 = vrot.lane.b32.xlu1 %v900_v56, %s986_s25 }
 0x596   : > { %v516_v58 = vpop.f32.mrb[8].mxu0 }
 0x597   : > { %v846_v59 = vpop.f32.mrb[9].mxu0 }
 0x598   : > { %v519_v60 = vpop.f32.mrb[10].mxu0 }
 0x599   : > { %v905_v61 = vpack.i.bf16 %v519_v60, %v516_v58  ;;  %v847_v62 = vpop.f32.mrb[11].mxu0 }
 0x59b   : > { %906 = vrot.lane.b32.xlu0 %v905_v61, %s987_s26 }
 0x59e   : > { %v637_v0 = vpop.f32.mrb[12].mxu0 }
 0x59f   : > { %v858_v63 = vpop.f32.mrb[13].mxu0 }
 0x5a0   : > { %v640_v2 = vpop.f32.mrb[14].mxu0 }
 0x5a1   : > { %v910_v3 = vpack.i.bf16 %v640_v2, %v637_v0  ;;  %v859_v4 = vpop.f32.mrb[15].mxu0 }
 0x5a3   : > { %911 = vrot.lane.b32.xlu1 %v910_v3, %s988_s27 }
 0x605   : > { %v902_v5 = vpop.permute.xlu1 %901 }
 0x606   : > { %v904_v7 = vunpack.i.h.bf16 %v902_v5  ;;  %v903_v8 = vunpack.i.l.bf16 %v902_v5 }
 0x608   : > { %v669_v12 = vsel %vm162_vm1, %v1065_v40, %v904_v7  ;;  %v668_v13 = vsel %vm162_vm1, %v1063_v38, %v903_v8 }
 0x60d   : > { %v907_v6 = vpop.permute.xlu0 %906 }
 0x60e   : > { %v909_v9 = vunpack.i.h.bf16 %v907_v6  ;;  %v908_v10 = vunpack.i.l.bf16 %v907_v6 }
 0x610   : > { %v671_v16 = vsel %vm210_vm2, %v669_v12, %v909_v9  ;;  %v670_v17 = vsel %vm210_vm2, %v668_v13, %v908_v10 }
 0x615   : > { %v912_v11 = vpop.permute.xlu1 %911 }
 0x616   : > { %v914_v14 = vunpack.i.h.bf16 %v912_v11  ;;  %v913_v15 = vunpack.i.l.bf16 %v912_v11 }
 0x618   : > { %v674_v18 = vsel %vm672_vm3, %v671_v16, %v914_v14  ;;  %v673_v19 = vsel %vm672_vm3, %v670_v17, %v913_v15 }
 0x619   : > { %v795_v20 = vpack.c.bf16 %v674_v18, %v674_v18  ;;  %v794_v21 = vpack.c.bf16 %v673_v19, %v673_v19 }
 0x61b   : > { %685 = vst.msk [vmem:[%s138_s30 + $0x4] sm:$0xf] %vm683_vm4, %v795_v20  ;;  %684 = vst.msk [vmem:[%s138_s30] sm:$0xf] %vm683_vm4, %v794_v21 }
 0x61c PF: > { %s11_s8 = sadd.s32 1, %s971_s8   ;;  %s1113_s6 = smov %s967_s7 }
 0x61d   : > { %p8_p5 = scmp.ge.s32.totalorder %s11_s8, 4   ;;  %s1114_s7 = smov %s1116_s9 }
 0x61f   :  { %10 = sbr.rel (!%p8_p5) target bundleno = 2 (0x2), region = 55 }

// kernel: a_call__.5
= control target key start
LH: loop header
LB: loop body
LE: loop exit
PB: predicated region body
PF: predicated region fallthrough
CT: control target
= control target key end

     0   :  { %10 = vsyncpa [#allocation3], 0  ;;  %s285_s18 = smov [#allocation2]   ;;  %s367_s0 = inlined_call_operand.hbm [shape: f32[32,32], index: 0, kind: input, shape index: {}]   ;;  %s368_s1 = inlined_call_operand.vmem [shape: f32[1,32], index: 1, kind: input, shape index: {}]   ;;  %s369_s2 = inlined_call_operand.vmem [shape: f32[1,32], index: 2, kind: input, shape index: {}]   ;;  %s370_s3 = inlined_call_operand.vmem [shape: bf16[32,96], index: 3, kind: input, shape index: {}]   ;;  %s371_s4 = inlined_call_operand.vmem [shape: f32[1,96], index: 4, kind: input, shape index: {}]   ;;  %s372_s5 = inlined_call_operand.vmem [shape: bf16[32,96], index: 5, kind: output, shape index: {}]  }
   0x1   :  { %s16_s19 = sshll.u32 %s285_s18, 4  ;;  %s261_s22 = scalar_lea.hbm %s367_s0, 512  ;;  %s17_s19 = int_to_ptr.vmem [resolvable:$true] %s16_s19 }
   0x2   :  { %p262_p0 = scmp.ne.s32.totalorder %s367_s0, %s261_s22  ;;  %p265_p1 = scmp.lt.u32.totalorder %s261_s22, %s367_s0 }
   0x4   :  { %p267_p2 = pnand %p265_p1, %p262_p0 }
   0x6   :  { %270 = shalt.err (!%p267_p2)
}
   0x7   :  { %s271_s27 = scalar_lea.vmem %s17_s19, 512  ;;  %p276_p4 = scmp.lt.s32.totalorder %s17_s19, %s17_s19 }
   0x8   :  { %p272_p3 = scmp.ne.s32.totalorder %s17_s19, %s271_s27  ;;  %p277_p5 = scmp.lt.s32.totalorder %s271_s27, %s271_s27 }
   0xa   :  { %p278_p6 = por %p277_p5, %p276_p4 }
   0xc   :  { %p279_p7 = pnand %p278_p6, %p272_p3 }
   0xe   :  { %282 = shalt.err (!%p279_p7)
}
   0xf   :  { %s286_s28 = smov 128   ;;  %s287_s29 = smov 8  }
  0x10   :  { %22 = dma.hbm_to_vmem [thread:$0]  %s367_s0, 512, %s17_s19, [#allocation3], %s286_s28, %s286_s28, %s287_s29  }
  0x11   :  { %283 = dma.done.wait [#allocation3], 512  }
  0x12   :  { %284 = vsyncadd [#allocation3], 4294966784  ;;  %vm39_vm0 = vcmask 261120   ;;  %v35_v0 = vld [vmem:[#allocation2] sm:$0xff]  ;;  %v37_v1 = vld [vmem:[#allocation2 + $0x10] sm:$0xff]  ;;  %vm211_vm1 = vcmask 781312  }
  0x13   :  { %v36_v2 = vld [vmem:[#allocation2 + $0x8] sm:$0xff]  ;;  %v40_v3 = vsel %vm39_vm0, %v35_v0, 0.0  ;;  %v46_v4 = vsel %vm39_vm0, %v37_v1, 0.0  ;;  %v38_v5 = vld [vmem:[#allocation2 + $0x18] sm:$0xff]  ;;  %v251_v28 = vld [vmem:[%s370_s3] sm:$0xff]  }
  0x14   :  { %41 = vadd.xlane.f32.xlu0 %v40_v3  ;;  %47 = vadd.xlane.f32.xlu1 %v46_v4  ;;  %v43_v6 = vsel %vm39_vm0, %v36_v2, 0.0  ;;  %v49_v7 = vsel %vm39_vm0, %v38_v5, 0.0  ;;  %v252_v29 = vld [vmem:[%s370_s3 + $0x8] sm:$0xff]   ;;  %v221_v44 = vld [vmem:[%s368_s1] ss:$0 sm:$0xff] }
  0x15   :  { %240 = vmatprep.subr.bf16.mxu0 %v251_v28  ;;  %v222_v50 = vld [vmem:[%s369_s2] ss:$0 sm:$0xff] }
  0x16   :  { %241 = vmatpush3.bf16.msra.mxu0 %v251_v28  ;;  %v223_v62 = vld [vmem:[%s371_s4] ss:$0 sm:$0xff] }
  0x17   :  { %242 = vmatprep.subr.bf16.mxu0 %v252_v29 }
  0x18   :  { %44 = vadd.xlane.f32.xlu0 %v43_v6  ;;  %50 = vadd.xlane.f32.xlu1 %v49_v7 }
  0x1a   :  { %243 = vmatpush3.bf16.msra.mxu0 %v252_v29 }
  0xa1   :  { %v42_v8 = vpop.xlane.xlu0 %41  ;;  %v48_v9 = vpop.xlane.xlu1 %47 }
  0xa2   :  { %v53_v10 = vmul.f32 0.03125, %v42_v8  ;;  %v55_v11 = vmul.f32 0.03125, %v48_v9 }
  0xa4   :  { %v57_v12 = vsub.f32 %v35_v0, %v53_v10  ;;  %v59_v13 = vsub.f32 %v37_v1, %v55_v11 }
  0xa5   :  { %v45_v14 = vpop.xlane.xlu0 %44  ;;  %v51_v15 = vpop.xlane.xlu1 %50 }
  0xa6   :  { %v54_v16 = vmul.f32 0.03125, %v45_v14  ;;  %v56_v17 = vmul.f32 0.03125, %v51_v15  ;;  %v61_v18 = vmul.f32 %v57_v12, %v57_v12  ;;  %v63_v19 = vmul.f32 %v59_v13, %v59_v13 }
  0xa8   :  { %v58_v20 = vsub.f32 %v36_v2, %v54_v16  ;;  %v60_v21 = vsub.f32 %v38_v5, %v56_v17  ;;  %v65_v22 = vsel %vm39_vm0, %v61_v18, 0.0  ;;  %v71_v23 = vsel %vm39_vm0, %v63_v19, 0.0 }
  0xa9   :  { %66 = vadd.xlane.f32.xlu0 %v65_v22 }
  0xaa   :  { %v62_v24 = vmul.f32 %v58_v20, %v58_v20  ;;  %v64_v25 = vmul.f32 %v60_v21, %v60_v21 }
  0xac   :  { %v68_v26 = vsel %vm39_vm0, %v62_v24, 0.0  ;;  %v74_v27 = vsel %vm39_vm0, %v64_v25, 0.0 }
  0xad   :  { %72 = vadd.xlane.f32.xlu0 %v71_v23  ;;  %69 = vadd.xlane.f32.xlu1 %v68_v26 }
  0xb1   :  { %75 = vadd.xlane.f32.xlu1 %v74_v27 }
 0x136   :  { %v67_v30 = vpop.xlane.xlu0 %66 }
 0x137   :  { %v77_v31 = vmul.f32 0.03125, %v67_v30 }
 0x139   :  { %v81_v32 = vadd.f32 1e-05, %v77_v31 }
 0x13a   :  { %v70_v33 = vpop.xlane.xlu1 %69  ;;  %v73_v34 = vpop.xlane.xlu0 %72 }
 0x13b   :  { %253 = vrsqrt.f32 %v81_v32  ;;  %v78_v35 = vmul.f32 0.03125, %v70_v33  ;;  %v79_v36 = vmul.f32 0.03125, %v73_v34 }
 0x13d   :  { %v82_v37 = vadd.f32 1e-05, %v78_v35  ;;  %v83_v38 = vadd.f32 1e-05, %v79_v36 }
 0x13e   :  { %v76_v39 = vpop.xlane.xlu1 %75 }
 0x13f   :  { %255 = vrsqrt.f32 %v82_v37  ;;  %v80_v40 = vmul.f32 0.03125, %v76_v39 }
 0x140   :  { %257 = vrsqrt.f32 %v83_v38 }
 0x141   :  { %v84_v41 = vadd.f32 1e-05, %v80_v40 }
 0x143   :  { %259 = vrsqrt.f32 %v84_v41 }
 0x145   :  { %v254_v42 = vpop.eup %253 }
 0x146   :  { %v89_v43 = vmul.f32 %v254_v42, %v57_v12 }
 0x148   :  { %v100_v48 = vmul.f32 %v221_v44, %v89_v43 }
 0x149   :  { %v256_v45 = vpop.eup %255 }
 0x14a   :  { %v258_v46 = vpop.eup %257  ;;  %v90_v47 = vmul.f32 %v256_v45, %v58_v20  ;;  %v111_v54 = vadd.f32 %v222_v50, %v100_v48 }
 0x14b   :  { %v91_v49 = vmul.f32 %v258_v46, %v59_v13 }
 0x14c   :  { %v101_v51 = vmul.f32 %v221_v44, %v90_v47 }
 0x14d   :  { %v260_v52 = vpop.eup %259  ;;  %v102_v56 = vmul.f32 %v221_v44, %v91_v49 }
 0x14e   :  { %v92_v53 = vmul.f32 %v260_v52, %v60_v21  ;;  %v112_v55 = vadd.f32 %v222_v50, %v101_v51 }
 0x14f   :  { %v113_v59 = vadd.f32 %v222_v50, %v102_v56 }
 0x150   :  { %v115_v57 = vpack.c.bf16 %v112_v55, %v111_v54  ;;  %v103_v58 = vmul.f32 %v221_v44, %v92_v53 }
 0x152   :  { %244 = vmatprep.mubr.msk.bf16.mxu0 %vm39_vm0, %v115_v57  ;;  %v114_v60 = vadd.f32 %v222_v50, %v103_v58 }
 0x154   :  { %v116_v61 = vpack.c.bf16 %v114_v60, %v113_v59 }
 0x156   :  { %245 = vmatmul.mubr.msk.bf16.vlgmr.msra.gmra.mrb[0].mxu0 %vm39_vm0, %v116_v61 }
 0x229   :  { %v246_v63 = vpop.f32.mrb[0].mxu0 }
 0x22a   :  { %v189_v0 = vadd.f32 %v246_v63, %v223_v62  ;;  %v180_v1 = vpop.f32.mrb[1].mxu0 }
 0x22b   :  { %v181_v2 = vadd.f32 %v223_v62, %v180_v1  ;;  %v247_v3 = vpop.f32.mrb[2].mxu0 }
 0x22c   :  { %v234_v4 = vpack.c.bf16 %v189_v0, %v189_v0  ;;  %v192_v5 = vadd.f32 %v247_v3, %v223_v62  ;;  %v183_v6 = vpop.f32.mrb[3].mxu0 }
 0x22d   :  { %v232_v7 = vpack.c.bf16 %v181_v2, %v181_v2  ;;  %v184_v8 = vadd.f32 %v223_v62, %v183_v6 }
 0x22e   :  { %214 = vst.msk [vmem:[%s372_s5 + $0x8] sm:$0xf] %vm211_vm1, %v234_v4  ;;  %v235_v9 = vpack.c.bf16 %v192_v5, %v192_v5 }
 0x22f   :  { %212 = vst.msk [vmem:[%s372_s5] sm:$0xf] %vm211_vm1, %v232_v7  ;;  %v233_v10 = vpack.c.bf16 %v184_v8, %v184_v8 }
 0x230   :  { %215 = vst.msk [vmem:[%s372_s5 + $0xc] sm:$0xf] %vm211_vm1, %v235_v9 }
 0x231   :  { %213 = vst.msk [vmem:[%s372_s5 + $0x4] sm:$0xf] %vm211_vm1, %v233_v10 }
 0x232   :  { %220 = vsyncpa [#allocation3], 1 }

// kernel: a_call__.8
= control target key start
LH: loop header
LB: loop body
LE: loop exit
PB: predicated region body
PF: predicated region fallthrough
CT: control target
= control target key end

     0   :  { %vm25_vm0 = vcmask 261120   ;;  %s370_s0 = inlined_call_operand.vmem [shape: f32[32,32], index: 0, kind: input, shape index: {}]   ;;  %s371_s3 = inlined_call_operand.vmem [shape: bf16[32,128], index: 3, kind: input, shape index: {}]   ;;  %s372_s1 = inlined_call_operand.vmem [shape: f32[1,32], index: 1, kind: input, shape index: {}]   ;;  %s373_s2 = inlined_call_operand.vmem [shape: f32[1,32], index: 2, kind: input, shape index: {}]   ;;  %s374_s4 = inlined_call_operand.vmem [shape: f32[1,128], index: 4, kind: input, shape index: {}]   ;;  %s375_s5 = inlined_call_operand.vmem [shape: bf16[32,128], index: 5, kind: output, shape index: {}]  }
   0x1   :  { %v21_v0 = vld [vmem:[%s370_s0] sm:$0xff]  ;;  %v23_v1 = vld [vmem:[%s370_s0 + $0x10] sm:$0xff]  ;;  %v22_v2 = vld [vmem:[%s370_s0 + $0x8] sm:$0xff] }
   0x2   :  { %v26_v3 = vsel %vm25_vm0, %v21_v0, 0.0  ;;  %v32_v4 = vsel %vm25_vm0, %v23_v1, 0.0  ;;  %v24_v5 = vld [vmem:[%s370_s0 + $0x18] sm:$0xff]  ;;  %v29_v6 = vsel %vm25_vm0, %v22_v2, 0.0  ;;  %v279_v28 = vld [vmem:[%s371_s3] sm:$0xff]   ;;  %v280_v29 = vld [vmem:[%s371_s3 + $0x8] sm:$0xff]  }
   0x3   :  { %27 = vadd.xlane.f32.xlu0 %v26_v3  ;;  %33 = vadd.xlane.f32.xlu1 %v32_v4  ;;  %v35_v7 = vsel %vm25_vm0, %v24_v5, 0.0  ;;  %v241_v44 = vld [vmem:[%s372_s1] ss:$0 sm:$0xff] }
   0x4   :  { %271 = vmatprep.subr.bf16.mxu0 %v279_v28  ;;  %v242_v50 = vld [vmem:[%s373_s2] ss:$0 sm:$0xff] }
   0x5   :  { %272 = vmatpush3.bf16.msra.mxu0 %v279_v28  ;;  %v243_v62 = vld [vmem:[%s374_s4] ss:$0 sm:$0xff] }
   0x6   :  { %273 = vmatprep.subr.bf16.mxu0 %v280_v29 }
   0x7   :  { %30 = vadd.xlane.f32.xlu0 %v29_v6  ;;  %36 = vadd.xlane.f32.xlu1 %v35_v7 }
   0x9   :  { %274 = vmatpush3.bf16.msra.mxu0 %v280_v29 }
  0x90   :  { %v28_v8 = vpop.xlane.xlu0 %27  ;;  %v34_v9 = vpop.xlane.xlu1 %33 }
  0x91   :  { %v39_v10 = vmul.f32 0.03125, %v28_v8  ;;  %v41_v11 = vmul.f32 0.03125, %v34_v9 }
  0x93   :  { %v43_v12 = vsub.f32 %v21_v0, %v39_v10  ;;  %v45_v13 = vsub.f32 %v23_v1, %v41_v11 }
  0x94   :  { %v31_v14 = vpop.xlane.xlu0 %30  ;;  %v37_v15 = vpop.xlane.xlu1 %36 }
  0x95   :  { %v40_v16 = vmul.f32 0.03125, %v31_v14  ;;  %v42_v17 = vmul.f32 0.03125, %v37_v15  ;;  %v47_v18 = vmul.f32 %v43_v12, %v43_v12  ;;  %v49_v19 = vmul.f32 %v45_v13, %v45_v13 }
  0x97   :  { %v44_v20 = vsub.f32 %v22_v2, %v40_v16  ;;  %v46_v21 = vsub.f32 %v24_v5, %v42_v17  ;;  %v51_v22 = vsel %vm25_vm0, %v47_v18, 0.0  ;;  %v57_v23 = vsel %vm25_vm0, %v49_v19, 0.0 }
  0x98   :  { %52 = vadd.xlane.f32.xlu0 %v51_v22 }
  0x99   :  { %v48_v24 = vmul.f32 %v44_v20, %v44_v20  ;;  %v50_v25 = vmul.f32 %v46_v21, %v46_v21 }
  0x9b   :  { %v54_v26 = vsel %vm25_vm0, %v48_v24, 0.0  ;;  %v60_v27 = vsel %vm25_vm0, %v50_v25, 0.0 }
  0x9c   :  { %58 = vadd.xlane.f32.xlu0 %v57_v23  ;;  %55 = vadd.xlane.f32.xlu1 %v54_v26 }
  0xa0   :  { %61 = vadd.xlane.f32.xlu1 %v60_v27 }
 0x125   :  { %v53_v30 = vpop.xlane.xlu0 %52 }
 0x126   :  { %v63_v31 = vmul.f32 0.03125, %v53_v30 }
 0x128   :  { %v67_v32 = vadd.f32 1e-05, %v63_v31 }
 0x129   :  { %v56_v33 = vpop.xlane.xlu1 %55  ;;  %v59_v34 = vpop.xlane.xlu0 %58 }
 0x12a   :  { %281 = vrsqrt.f32 %v67_v32  ;;  %v64_v35 = vmul.f32 0.03125, %v56_v33  ;;  %v65_v36 = vmul.f32 0.03125, %v59_v34 }
 0x12c   :  { %v68_v37 = vadd.f32 1e-05, %v64_v35  ;;  %v69_v38 = vadd.f32 1e-05, %v65_v36 }
 0x12d   :  { %v62_v39 = vpop.xlane.xlu1 %61 }
 0x12e   :  { %283 = vrsqrt.f32 %v68_v37  ;;  %v66_v40 = vmul.f32 0.03125, %v62_v39 }
 0x12f   :  { %285 = vrsqrt.f32 %v69_v38 }
 0x130   :  { %v70_v41 = vadd.f32 1e-05, %v66_v40 }
 0x132   :  { %287 = vrsqrt.f32 %v70_v41 }
 0x134   :  { %v282_v42 = vpop.eup %281 }
 0x135   :  { %v75_v43 = vmul.f32 %v282_v42, %v43_v12 }
 0x137   :  { %v86_v48 = vmul.f32 %v241_v44, %v75_v43 }
 0x138   :  { %v284_v45 = vpop.eup %283 }
 0x139   :  { %v286_v46 = vpop.eup %285  ;;  %v76_v47 = vmul.f32 %v284_v45, %v44_v20  ;;  %v97_v54 = vadd.f32 %v242_v50, %v86_v48 }
 0x13a   :  { %v77_v49 = vmul.f32 %v286_v46, %v45_v13 }
 0x13b   :  { %v87_v51 = vmul.f32 %v241_v44, %v76_v47 }
 0x13c   :  { %v288_v52 = vpop.eup %287  ;;  %v88_v56 = vmul.f32 %v241_v44, %v77_v49 }
 0x13d   :  { %v78_v53 = vmul.f32 %v288_v52, %v46_v21  ;;  %v98_v55 = vadd.f32 %v242_v50, %v87_v51 }
 0x13e   :  { %v99_v59 = vadd.f32 %v242_v50, %v88_v56 }
 0x13f   :  { %v101_v57 = vpack.c.bf16 %v98_v55, %v97_v54  ;;  %v89_v58 = vmul.f32 %v241_v44, %v78_v53 }
 0x141   :  { %275 = vmatprep.mubr.msk.bf16.mxu0 %vm25_vm0, %v101_v57  ;;  %v100_v60 = vadd.f32 %v242_v50, %v89_v58 }
 0x143   :  { %v102_v61 = vpack.c.bf16 %v100_v60, %v99_v59 }
 0x145   :  { %276 = vmatmul.mubr.msk.bf16.vlgmr.msra.gmra.mrb[0].mxu0 %vm25_vm0, %v102_v61 }
 0x218   :  { %v277_v63 = vpop.f32.mrb[0].mxu0 }
 0x219   :  { %v175_v0 = vadd.f32 %v277_v63, %v243_v62  ;;  %v166_v1 = vpop.f32.mrb[1].mxu0 }
 0x21a   :  { %v167_v2 = vadd.f32 %v243_v62, %v166_v1  ;;  %v278_v3 = vpop.f32.mrb[2].mxu0 }
 0x21b   :  { %v187_v4 = vmul.f32 0.044715, %v175_v0  ;;  %v178_v5 = vadd.f32 %v278_v3, %v243_v62  ;;  %v169_v6 = vpop.f32.mrb[3].mxu0  ;;  %v183_v33 = vmul.f32 0.5, %v175_v0 }
 0x21c   :  { %v185_v7 = vmul.f32 0.044715, %v167_v2  ;;  %v170_v8 = vadd.f32 %v243_v62, %v169_v6  ;;  %v181_v36 = vmul.f32 0.5, %v167_v2 }
 0x21d   :  { %v191_v9 = vmul.f32 %v187_v4, %v175_v0  ;;  %v188_v10 = vmul.f32 0.044715, %v178_v5  ;;  %v184_v34 = vmul.f32 0.5, %v178_v5 }
 0x21e   :  { %v189_v11 = vmul.f32 %v185_v7, %v167_v2  ;;  %v186_v12 = vmul.f32 0.044715, %v170_v8  ;;  %v182_v37 = vmul.f32 0.5, %v170_v8 }
 0x21f   :  { %v195_v13 = vmul.f32 %v191_v9, %v175_v0  ;;  %v192_v14 = vmul.f32 %v188_v10, %v178_v5 }
 0x220   :  { %v193_v15 = vmul.f32 %v189_v11, %v167_v2  ;;  %v190_v16 = vmul.f32 %v186_v12, %v170_v8 }
 0x221   :  { %v199_v17 = vadd.f32 %v195_v13, %v175_v0  ;;  %v196_v18 = vmul.f32 %v192_v14, %v178_v5 }
 0x222   :  { %v197_v19 = vadd.f32 %v193_v15, %v167_v2  ;;  %v194_v20 = vmul.f32 %v190_v16, %v170_v8 }
 0x223   :  { %v203_v21 = vmul.f32 0.7978846, %v199_v17  ;;  %v200_v22 = vadd.f32 %v196_v18, %v178_v5 }
 0x224   :  { %v201_v23 = vmul.f32 0.7978846, %v197_v19  ;;  %v198_v24 = vadd.f32 %v194_v20, %v170_v8 }
 0x225   :  { %289 = vtanh.f32 %v203_v21  ;;  %v204_v25 = vmul.f32 0.7978846, %v200_v22 }
 0x226   :  { %291 = vtanh.f32 %v201_v23  ;;  %v202_v26 = vmul.f32 0.7978846, %v198_v24 }
 0x227   :  { %293 = vtanh.f32 %v204_v25 }
 0x228   :  { %295 = vtanh.f32 %v202_v26 }
 0x22f   :  { %v290_v27 = vpop.eup %289 }
 0x230   :  { %v292_v28 = vpop.eup %291  ;;  %v211_v29 = vadd.f32 1.0, %v290_v27 }
 0x231   :  { %v294_v30 = vpop.eup %293  ;;  %v209_v31 = vadd.f32 1.0, %v292_v28 }
 0x232   :  { %v296_v32 = vpop.eup %295  ;;  %v212_v35 = vadd.f32 1.0, %v294_v30  ;;  %v215_v39 = vmul.f32 %v211_v29, %v183_v33 }
 0x233   :  { %v210_v38 = vadd.f32 1.0, %v296_v32  ;;  %v213_v41 = vmul.f32 %v209_v31, %v181_v36 }
 0x234   :  { %v216_v40 = vmul.f32 %v212_v35, %v184_v34 }
 0x235   :  { %v214_v42 = vmul.f32 %v210_v38, %v182_v37 }
 0x236   :  { %v264_v43 = vpack.c.bf16 %v216_v40, %v215_v39 }
 0x237   :  { %v259_v44 = vpack.c.bf16 %v214_v42, %v213_v41 }
 0x238   :  { %266 = vst [vmem:[%s375_s5 + $0x8] sm:$0xff] %v264_v43  }
 0x239   :  { %260 = vst [vmem:[%s375_s5] sm:$0xff] %v259_v44  }

// kernel: a_call__.9
= control target key start
LH: loop header
LB: loop body
LE: loop exit
PB: predicated region body
PF: predicated region fallthrough
CT: control target
= control target key end

     0   :  { %s374_s0 = inlined_call_operand.vmem [shape: bf16[32,128], index: 0, kind: input, shape index: {}]   ;;  %s375_s1 = inlined_call_operand.vmem [shape: bf16[128,32], index: 1, kind: input, shape index: {}]   ;;  %s376_s2 = inlined_call_operand.vmem [shape: f32[1,32], index: 2, kind: input, shape index: {}]   ;;  %s377_s3 = inlined_call_operand.vmem [shape: f32[1,32], index: 3, kind: input, shape index: {}]   ;;  %s378_s4 = inlined_call_operand.vmem [shape: f32[32,32], index: 4, kind: input, shape index: {}]   ;;  %s379_s5 = inlined_call_operand.hbm [shape: f32[32,32], index: 5, kind: output, shape index: {}]  }
   0x1   :  { %v243_v0 = vld [vmem:[%s375_s1] sm:$0xff]   ;;  %v244_v1 = vld [vmem:[%s375_s1 + $0x8] sm:$0xff]   ;;  %v245_v2 = vld [vmem:[%s375_s1 + $0x10] sm:$0xff]  }
   0x2   :  { %220 = vmatprep.subr.bf16.mxu0 %v243_v0  ;;  %v246_v3 = vld [vmem:[%s375_s1 + $0x18] sm:$0xff]   ;;  %v251_v4 = vld [vmem:[%s374_s0] sm:$0xff]  }
   0x3   :  { %221 = vmatpush3.bf16.msra.mxu0 %v243_v0  ;;  %236 = vmatprep.mubr.bf16.mxu0 %v251_v4 }
   0x4   :  { %222 = vmatprep.subr.bf16.mxu0 %v244_v1 }
   0x7   :  { %223 = vmatpush3.bf16.msra.mxu0 %v244_v1 }
   0x8   :  { %224 = vmatprep.subr.bf16.mxu0 %v245_v2 }
   0x9   :  { %10 = vsyncpa [#allocation3], 0  ;;  %v247_v5 = vld [vmem:[%s375_s1 + $0x20] sm:$0xff]   ;;  %v248_v6 = vld [vmem:[%s375_s1 + $0x28] sm:$0xff]   ;;  %vm177_vm0 = vcmask 261120  }
   0xa   :  { %v249_v7 = vld [vmem:[%s375_s1 + $0x30] sm:$0xff]   ;;  %v250_v8 = vld [vmem:[%s375_s1 + $0x38] sm:$0xff]   ;;  %v252_v9 = vld [vmem:[%s374_s0 + $0x8] sm:$0xff]  }
   0xb   :  { %225 = vmatpush3.bf16.msra.mxu0 %v245_v2  ;;  %v198_v10 = vld [vmem:[%s376_s2] ss:$0 sm:$0xff]  ;;  %v171_v15 = vld [vmem:[%s378_s4 + $0x10] sm:$0xff]  ;;  %v172_v23 = vld [vmem:[%s378_s4 + $0x18] sm:$0xff] }
   0xc   :  { %226 = vmatprep.subr.bf16.mxu0 %v246_v3  ;;  %v209_v12 = vld [vmem:[%s377_s3] ss:$0 sm:$0xff]  ;;  %s277_s3 = smov [#allocation2]   ;;  %v170_v27 = vld [vmem:[%s378_s4 + $0x8] sm:$0xff] }
   0xd   :  { %v169_v19 = vld [vmem:[%s378_s4] sm:$0xff]  ;;  %s187_s20 = sshll.u32 %s277_s3, 4  ;;  %s188_s20 = int_to_ptr.vmem [resolvable:$true] %s187_s20 }
   0xe   :  { %s253_s23 = scalar_lea.vmem %s188_s20, 512  ;;  %p258_p1 = scmp.lt.s32.totalorder %s188_s20, %s188_s20 }
   0xf   :  { %227 = vmatpush3.bf16.msra.mxu0 %v246_v3  ;;  %p254_p0 = scmp.ne.s32.totalorder %s188_s20, %s253_s23  ;;  %p259_p2 = scmp.lt.s32.totalorder %s253_s23, %s253_s23 }
  0x10   :  { %228 = vmatprep.subr.bf16.mxu0 %v247_v5 }
  0x11   :  { %p260_p3 = por %p259_p2, %p258_p1 }
  0x13   :  { %229 = vmatpush3.bf16.msra.mxu0 %v247_v5  ;;  %p261_p4 = pnand %p260_p3, %p254_p0 }
  0x14   :  { %230 = vmatprep.subr.bf16.mxu0 %v248_v6 }
  0x17   :  { %231 = vmatpush3.bf16.msra.mxu0 %v248_v6 }
  0x18   :  { %232 = vmatprep.subr.bf16.mxu0 %v249_v7 }
  0x1b   :  { %233 = vmatpush3.bf16.msra.mxu0 %v249_v7 }
  0x1c   :  { %234 = vmatprep.subr.bf16.mxu0 %v250_v8 }
  0x1f   :  { %235 = vmatpush3.bf16.msra.mxu0 %v250_v8 }
  0x22   :  { %237 = vmatmul.mubr.bf16.vlgmr.msra.gmra.mrb[0].mxu0 %v252_v9 }
  0xf5   :  { %v238_v11 = vpop.f32.mrb[0].mxu0 }
  0xf6   :  { %v152_v13 = vadd.f32 %v238_v11, %v198_v10  ;;  %v143_v14 = vpop.f32.mrb[1].mxu0 }
  0xf7   :  { %v144_v16 = vadd.f32 %v198_v10, %v143_v14  ;;  %v239_v17 = vpop.f32.mrb[2].mxu0 }
  0xf8   :  { %v167_v18 = vmul.f32 %v209_v12, %v152_v13  ;;  %v155_v20 = vadd.f32 %v239_v17, %v198_v10  ;;  %v146_v21 = vpop.f32.mrb[3].mxu0 }
  0xf9   :  { %v165_v22 = vmul.f32 %v209_v12, %v144_v16  ;;  %v147_v24 = vadd.f32 %v198_v10, %v146_v21 }
  0xfa   :  { %v175_v25 = vadd.f32 %v171_v15, %v167_v18  ;;  %v168_v26 = vmul.f32 %v209_v12, %v155_v20 }
  0xfb   :  { %v173_v28 = vadd.f32 %v169_v19, %v165_v22  ;;  %v166_v29 = vmul.f32 %v209_v12, %v147_v24 }
  0xfc   :  { %180 = vst.msk [vmem:[#allocation2 + $0x10] sm:$0xff] %vm177_vm0, %v175_v25  ;;  %v176_v30 = vadd.f32 %v172_v23, %v168_v26 }
  0xfd   :  { %178 = vst.msk [vmem:[#allocation2] sm:$0xff] %vm177_vm0, %v173_v28  ;;  %v174_v31 = vadd.f32 %v170_v27, %v166_v29 }
  0xfe   :  { %181 = vst.msk [vmem:[#allocation2 + $0x18] sm:$0xff] %vm177_vm0, %v176_v30 }
  0xff   :  { %179 = vst.msk [vmem:[#allocation2 + $0x8] sm:$0xff] %vm177_vm0, %v174_v31 }
 0x100   :  { %264 = shalt.err (!%p261_p4)
}
 0x101   :  { %s265_s25 = scalar_lea.hbm %s379_s5, 512 }
 0x102   :  { %p266_p5 = scmp.ne.s32.totalorder %s379_s5, %s265_s25  ;;  %p269_p6 = scmp.lt.u32.totalorder %s265_s25, %s379_s5 }
 0x104   :  { %p271_p7 = pnand %p269_p6, %p266_p5 }
 0x106   :  { %274 = shalt.err (!%p271_p7)
}
 0x107   :  { %s278_s30 = smov 128   ;;  %s279_s6 = smov 8  }
 0x108   :  { %193 = dma.vmem_to_hbm [thread:$0]  %s188_s20, 512, %s379_s5, [#allocation3], %s278_s30, %s278_s30, %s279_s6  }
 0x109   :  { %275 = dma.done.wait [#allocation3], 512  }
 0x10a   :  { %276 = vsyncadd [#allocation3], 4294966784 }
 0x10b   :  { %197 = vsyncpa [#allocation3], 1 }

</bundles_post_ra>
